<compile_context>
chip_gen: v5e
topology: v5e:2x2
jax: 0.10.0
libtpu: 0.0.40
codegen_flags: <defaults>
</compile_context>

<pallas_src>
import math

import jax
import jax.numpy as jnp
from jax.experimental import pallas as pl
from jax.experimental.pallas import tpu as pltpu

# ----- scaled-down config (real CLIP ViT-B/32 text tower: 77/512/8/12/49408) -----
B = 2            # batch
S = 8            # context length
D = 32           # transformer width
H = 4            # heads
HD = D // H      # head dim
MLP = 4 * D      # MLP hidden
VOCAB = 64       # vocab size
EMBED = 32       # text projection output dim
LAYERS = 2       # transformer layers
LN_EPS = 1e-5
BS = B * S
SCALE = 1.0 / math.sqrt(HD)

MXU_DT = jnp.bfloat16     # streamed-weight / matmul-operand dtype (accumulation stays f32)

assert S % 8 == 0 and D % 8 == 0 and MLP % 8 == 0, "keep tiles sublane-aligned"

# row layout of the packed per-layer "small stuff" block: [L, 8, MLP]
_R_LN1G, _R_LN1B, _R_LN2G, _R_LN2B, _R_BOUT, _R_BPR, _R_BFC, _R_BQKV = range(8)


# --------------------------- fused encoder kernel ---------------------------
def _encoder_kernel(x0_ref,
                    wqkv_ref, wo_ref, wfc_ref, wpr_ref, small_ref,
                    lnf_ref, wproj_ref,
                    y_ref,
                    x_vmem, mask_vmem):
    l = pl.program_id(1)      # layer axis (arbitrary / carried)

    # ---- per-batch-tile init: resident activations + causal mask ----
    # (rebuilt at l==0 for every batch tile so it is correct under megacore sharding of axis 0)
    @pl.when(l == 0)
    def _init():
        x_vmem[...] = x0_ref[...]
        row = jax.lax.broadcasted_iota(jnp.int32, (S, S), 0)
        col = jax.lax.broadcasted_iota(jnp.int32, (S, S), 1)
        mask_vmem[...] = jnp.where(col > row, jnp.float32(-1e30), jnp.float32(0.0))

    def layer_norm(v, g, b):
        mu = jnp.mean(v, axis=-1, keepdims=True)
        var = jnp.mean((v - mu) ** 2, axis=-1, keepdims=True)
        return (v - mu) * jax.lax.rsqrt(var + LN_EPS) * g + b

    # one fused DMA worth of small per-layer tensors (f32)
    small = small_ref[0]                                   # [8, MLP]
    ln1_g = small[_R_LN1G:_R_LN1G + 1, :D]
    ln1_b = small[_R_LN1B:_R_LN1B + 1, :D]
    ln2_g = small[_R_LN2G:_R_LN2G + 1, :D]
    ln2_b = small[_R_LN2B:_R_LN2B + 1, :D]
    b_out = small[_R_BOUT:_R_BOUT + 1, :D]
    b_pr = small[_R_BPR:_R_BPR + 1, :D]
    b_fc = small[_R_BFC:_R_BFC + 1, :]
    b_qkv = small[_R_BQKV:_R_BQKV + 1, :3 * D]

    x = x_vmem[...]                                        # [S, D] f32, resident across layers
    mask = mask_vmem[...]                                  # [S, S]

    # ---- LayerNorm 1 + causal multi-head self-attention ----
    xh = layer_norm(x, ln1_g, ln1_b)

    # full-width fused QKV projection (lane-dense N = 3D), f32 accumulation
    qkv = jnp.dot(xh.astype(MXU_DT), wqkv_ref[0],
                  preferred_element_type=jnp.float32) + b_qkv          # [S, 3D] f32
    q = qkv[:, 0 * D:1 * D].reshape(S, H, HD).astype(MXU_DT)
    k = qkv[:, 1 * D:2 * D].reshape(S, H, HD).astype(MXU_DT)
    v = qkv[:, 2 * D:3 * D].reshape(S, H, HD).astype(MXU_DT)

    # head split only in the batched score / context einsums
    s = jnp.einsum('qhd,khd->hqk', q, k,
                   preferred_element_type=jnp.float32) * SCALE + mask[None]
    s = s - jnp.max(s, axis=-1, keepdims=True)             # softmax in f32 (VPU)
    p = jnp.exp(s)
    p = p * pl.reciprocal(jnp.sum(p, axis=-1, keepdims=True), approx=True)   # EUP vrcp
    ctx = jnp.einsum('hqk,khd->qhd', p.astype(MXU_DT), v,
                     preferred_element_type=jnp.float32).reshape(S, D)

    # single full-width out-projection ([S,D]@[D,D]) instead of per-head accumulation
    attn = jnp.dot(ctx.astype(MXU_DT), wo_ref[0],
                   preferred_element_type=jnp.float32) + b_out
    x = x + attn                                            # residual 1 (f32)

    # ---- LayerNorm 2 + MLP (QuickGELU) ----
    xh = layer_norm(x, ln2_g, ln2_b)
    h1 = jnp.dot(xh.astype(MXU_DT), wfc_ref[0],
                 preferred_element_type=jnp.float32) + b_fc
    h1 = h1 * jax.nn.sigmoid(1.702 * h1)                    # QuickGELU (CLIP), f32
    x = x + jnp.dot(h1.astype(MXU_DT), wpr_ref[0],
                    preferred_element_type=jnp.float32) + b_pr

    x_vmem[...] = x                                         # carry to next layer

    # ---- last layer step: fused ln_final + text projection (all rows; EOT gather outside) ----
    @pl.when(l == LAYERS - 1)
    def _final():
        xf = layer_norm(x, lnf_ref[0:1, :], lnf_ref[1:2, :])
        y_ref[...] = jnp.dot(xf.astype(MXU_DT), wproj_ref[...],
                             preferred_element_type=jnp.float32).astype(y_ref.dtype)


# --------------------------- parameter init / packing ---------------------------
def init_params(key):
    def nrm(k, shape, s=0.02):
        return (s * jax.random.normal(k, shape)).astype(jnp.float32)

    keys = jax.random.split(key, 3 + LAYERS)
    params = {
        'tok_emb': nrm(keys[0], (VOCAB, D)),
        'pos_emb': nrm(keys[1], (S, D), 0.01),
        'ln_f_g': jnp.ones((D,), jnp.float32),
        'ln_f_b': jnp.zeros((D,), jnp.float32),
        'text_proj': nrm(keys[2], (D, EMBED), D ** -0.5),
        'layers': [],
    }
    for l in range(LAYERS):
        ks = jax.random.split(keys[3 + l], 12)
        params['layers'].append({
            'ln1_g': jnp.ones((D,), jnp.float32),
            'ln1_b': jnp.zeros((D,), jnp.float32),
            'w_q': nrm(ks[0], (D, D)),
            'w_k': nrm(ks[1], (D, D)),
            'w_v': nrm(ks[2], (D, D)),
            'b_q': nrm(ks[3], (D,), 0.01),
            'b_k': nrm(ks[4], (D,), 0.01),
            'b_v': nrm(ks[5], (D,), 0.01),
            'w_out': nrm(ks[6], (D, D)),
            'b_out': nrm(ks[7], (D,), 0.01),
            'ln2_g': jnp.ones((D,), jnp.float32),
            'ln2_b': jnp.zeros((D,), jnp.float32),
            'w_fc': nrm(ks[8], (D, MLP)),
            'b_fc': nrm(ks[10], (MLP,), 0.01),
            'w_pr': nrm(ks[9], (MLP, D)),
            'b_pr': nrm(ks[11], (D,), 0.01),
        })
    return params


def pack_params(params):
    """Stack per-layer weights on a leading LAYERS axis; fuse QKV; pack all small tensors
    into one [L, 8, MLP] block; cast big matmul weights to bf16 for streaming."""
    def stack(name):
        return jnp.stack([lay[name] for lay in params['layers']], axis=0)

    def pad_row(a):                                   # [L, w] -> [L, MLP]
        return jnp.pad(a, ((0, 0), (0, MLP - a.shape[-1])))

    wqkv = jnp.concatenate([stack('w_q'), stack('w_k'), stack('w_v')], axis=-1)   # [L, D, 3D]
    bqkv = jnp.concatenate([stack('b_q'), stack('b_k'), stack('b_v')], axis=-1)   # [L, 3D]

    small = jnp.stack([                               # [L, 8, MLP] (rows = _R_* layout)
        pad_row(stack('ln1_g')), pad_row(stack('ln1_b')),
        pad_row(stack('ln2_g')), pad_row(stack('ln2_b')),
        pad_row(stack('b_out')), pad_row(stack('b_pr')),
        stack('b_fc'), pad_row(bqkv),
    ], axis=1).astype(jnp.float32)

    return {
        'wqkv': wqkv.astype(MXU_DT),                  # [L, D, 3D]  bf16 stream
        'wo': stack('w_out').astype(MXU_DT),          # [L, D, D]
        'w_fc': stack('w_fc').astype(MXU_DT),         # [L, D, MLP]
        'w_pr': stack('w_pr').astype(MXU_DT),         # [L, MLP, D]
        'small': small,                               # [L, 8, MLP] f32
        'lnf': jnp.stack([params['ln_f_g'], params['ln_f_b']], axis=0),  # [2, D] f32
        'text_proj': params['text_proj'].astype(MXU_DT),                 # [D, EMBED]
    }


def _cost_estimate(inputs):
    flops_layer = (2 * S * D * 3 * D              # fused QKV
                   + 2 * 2 * H * S * S * HD       # scores + context
                   + 2 * S * D * D                # out projection
                   + 2 * 2 * S * D * MLP)         # MLP fc + proj
    flops = B * (LAYERS * flops_layer + 2 * S * D * EMBED)
    # exp + sigmoid + reciprocal + rsqrt (per-layer LNs + ln_final)
    transcendentals = B * (LAYERS * (H * S * S + S * MLP + H * S + 2 * S) + S)
    bytes_accessed = sum(int(a.size) * a.dtype.itemsize for a in inputs) + BS * EMBED * 4
    return pl.CostEstimate(flops=flops, transcendentals=transcendentals,
                           bytes_accessed=bytes_accessed)


# --------------------------- full forward ---------------------------
def clip_encode_text(tokens, params):
    # TODO(synk): clip_custom.tokenize (BPE tokenizer) has no Pallas equivalent; we take
    # pre-tokenized int ids as input (EOT = highest id, as CLIP assumes for the argmax gather).
    packed = pack_params(params)

    # embedding gather stays in JAX (tiny, data-dependent); activations flattened to [B*S, D]
    x0 = (jnp.take(params['tok_emb'], tokens, axis=0)
          + params['pos_emb'][None, :, :]).reshape(BS, D).astype(jnp.float32)

    def layer_spec(a):
        """Per-layer-stacked tensor: stream one layer block per (trailing) grid step."""
        zeros = (0,) * (a.ndim - 1)
        return pl.BlockSpec((1,) + tuple(a.shape[1:]), lambda b, l, z=zeros: (l,) + z)

    def const_spec(a):
        """Whole-array block, same for every grid step (fetched once)."""
        zeros = (0,) * a.ndim
        return pl.BlockSpec(tuple(a.shape), lambda b, l, z=zeros: z)

    per_layer = [packed['wqkv'], packed['wo'], packed['w_fc'], packed['w_pr'], packed['small']]
    const_tail = [packed['lnf'], packed['text_proj']]
    inputs = [x0] + per_layer + const_tail

    in_specs = ([pl.BlockSpec((S, D), lambda b, l: (b, 0))]        # per-batch row tile
                + [layer_spec(a) for a in per_layer]
                + [const_spec(a) for a in const_tail])

    y_full = pl.pallas_call(
        _encoder_kernel,
        out_shape=jax.ShapeDtypeStruct((BS, EMBED), jnp.float32),
        grid=(B, LAYERS),                                          # (parallel rows, layer carry)
        in_specs=in_specs,
        out_specs=pl.BlockSpec((S, EMBED), lambda b, l: (b, 0)),
        scratch_shapes=[pltpu.VMEM((S, D), jnp.float32),           # resident activations (per tile)
                        pltpu.VMEM((S, S), jnp.float32)],          # causal mask
        compiler_params=pltpu.CompilerParams(
            dimension_semantics=("parallel", "arbitrary"),
            vmem_limit_bytes=48 * 1024 * 1024),                    # v7x headroom; > v6e 32MiB default
        cost_estimate=_cost_estimate(inputs),
    )(*inputs)

    # EOT gather (projection is linear, so project-then-gather == gather-then-project)
    eot_idx = jnp.argmax(tokens, axis=-1)                          # CLIP: EOT token has max id
    return y_full.reshape(B, S, EMBED)[jnp.arange(B), eot_idx]


# --------------------------- pure-JAX reference (for correctness) ---------------------------
def _ref_encode(tokens, params):
    def ln(x, g, b):
        mu = x.mean(-1, keepdims=True)
        var = ((x - mu) ** 2).mean(-1, keepdims=True)
        return (x - mu) / jnp.sqrt(var + LN_EPS) * g + b

    x = params['tok_emb'][tokens] + params['pos_emb'][None]
    mask = jnp.where(jnp.arange(S)[None, :] > jnp.arange(S)[:, None], -1e30, 0.0)
    for p in params['layers']:
        xh = ln(x, p['ln1_g'], p['ln1_b'])
        q = (xh @ p['w_q'] + p['b_q']).reshape(B, S, H, HD).transpose(0, 2, 1, 3)
        k = (xh @ p['w_k'] + p['b_k']).reshape(B, S, H, HD).transpose(0, 2, 1, 3)
        v = (xh @ p['w_v'] + p['b_v']).reshape(B, S, H, HD).transpose(0, 2, 1, 3)
        s = jnp.einsum('bhqd,bhkd->bhqk', q, k) / math.sqrt(HD) + mask
        pw = jax.nn.softmax(s, axis=-1)
        a = jnp.einsum('bhqk,bhkd->bhqd', pw, v).transpose(0, 2, 1, 3).reshape(B, S, D)
        x = x + (a @ p['w_out'] + p['b_out'])
        xh = ln(x, p['ln2_g'], p['ln2_b'])
        h1 = xh @ p['w_fc'] + p['b_fc']
        h1 = h1 * jax.nn.sigmoid(1.702 * h1)
        x = x + (h1 @ p['w_pr'] + p['b_pr'])
    x = ln(x, params['ln_f_g'], params['ln_f_b'])
    eot = jnp.argmax(tokens, axis=-1)
    return x[jnp.arange(B), eot] @ params['text_proj']


def _quantize_like_kernel(params):
    """f32 params with the big matmul weights rounded through bf16 (what the kernel streams),
    so the reference isolates kernel numerics from the deliberate weight quantization."""
    q = dict(params)
    q['text_proj'] = params['text_proj'].astype(jnp.bfloat16).astype(jnp.float32)
    q['layers'] = []
    for lay in params['layers']:
        lq = dict(lay)
        for n in ('w_q', 'w_k', 'w_v', 'w_out', 'w_fc', 'w_pr'):
            lq[n] = lay[n].astype(jnp.bfloat16).astype(jnp.float32)
        q['layers'].append(lq)
    return q


if __name__ == "__main__":
    key = jax.random.PRNGKey(0)
    pkey, tkey = jax.random.split(key)
    params = init_params(pkey)

    # deterministic synthetic "tokenized text": SOT ... EOT, EOT is the max id (VOCAB-1)
    tokens = jax.random.randint(tkey, (B, S), 1, VOCAB - 1, dtype=jnp.int32)
    tokens = tokens.at[:, 0].set(1)
    tokens = tokens.at[:, -1].set(VOCAB - 1)

    out = jax.block_until_ready(clip_encode_text(tokens, params))
    ref = _ref_encode(tokens, _quantize_like_kernel(params))

    assert out.shape == (B, EMBED) and out.dtype == jnp.float32
    # bf16 matmul operands + approx reciprocal -> compare against bf16-weight reference at 2e-2
    assert jnp.allclose(out, ref, rtol=2e-2, atol=2e-2), "mismatch vs pure-JAX reference"

    print("KERNEL_OK")
</pallas_src>

<mosaic_0001>
module attributes {stable_mosaic.version = 11 : i64} {
  func.func @_encoder_kernel(%arg0: i32, %arg1: i32, %arg2: memref<8x32xf32, #tpu.memory_space<vmem>>, %arg3: memref<1x32x96xbf16, #tpu.memory_space<vmem>>, %arg4: memref<1x32x32xbf16, #tpu.memory_space<vmem>>, %arg5: memref<1x32x128xbf16, #tpu.memory_space<vmem>>, %arg6: memref<1x128x32xbf16, #tpu.memory_space<vmem>>, %arg7: memref<1x8x128xf32, #tpu.memory_space<vmem>>, %arg8: memref<2x32xf32, #tpu.memory_space<vmem>>, %arg9: memref<32x32xbf16, #tpu.memory_space<vmem>>, %arg10: memref<8x32xf32, #tpu.memory_space<vmem>>, %arg11: memref<8x32xf32, #tpu.memory_space<vmem>>, %arg12: memref<8x8xf32, #tpu.memory_space<vmem>>) attributes {dimension_semantics = [#tpu.dimension_semantics<parallel>, #tpu.dimension_semantics<arbitrary>], iteration_bounds = array<i64: 2, 2>, scalar_prefetch = 0 : i64, scratch_operands = 2 : i64, tpu.core_type = #tpu.core_type<tc>, window_params = [{transform_indices = @transform_0, window_bounds = array<i64: 8, 32>}, {transform_indices = @transform_1, window_bounds = array<i64: 1, 32, 96>}, {transform_indices = @transform_2, window_bounds = array<i64: 1, 32, 32>}, {transform_indices = @transform_3, window_bounds = array<i64: 1, 32, 128>}, {transform_indices = @transform_4, window_bounds = array<i64: 1, 128, 32>}, {transform_indices = @transform_5, window_bounds = array<i64: 1, 8, 128>}, {pipeline_mode = #tpu.pipeline_mode<synchronous>, transform_indices = @transform_6, window_bounds = array<i64: 2, 32>}, {pipeline_mode = #tpu.pipeline_mode<synchronous>, transform_indices = @transform_7, window_bounds = array<i64: 32, 32>}, {transform_indices = @transform_8, window_bounds = array<i64: 8, 32>}]} {
    %c0_i32 = arith.constant 0 : i32
    %0 = arith.cmpi eq, %arg1, %c0_i32 : i32
    %1 = arith.extui %0 : i1 to i32
    %c0_i32_0 = arith.constant 0 : i32
    %2 = arith.cmpi ne, %1, %c0_i32_0 : i32
    scf.if %2 {
      %c0_42 = arith.constant 0 : index
      %c0_43 = arith.constant 0 : index
      %126 = vector.load %arg2[%c0_42, %c0_43] : memref<8x32xf32, #tpu.memory_space<vmem>>, vector<8x32xf32>
      %c0_44 = arith.constant 0 : index
      %c0_45 = arith.constant 0 : index
      %127 = vector.load %arg11[%c0_44, %c0_45] : memref<8x32xf32, #tpu.memory_space<vmem>>, vector<8x32xf32>
      tpu.vector_store %arg11[%c0_44, %c0_45], %126 {strides = array<i32>} : memref<8x32xf32, #tpu.memory_space<vmem>>, vector<8x32xf32>,
      %128 = tpu.iota {dimensions = array<i32: 0>} : vector<8x8xi32>
      %129 = tpu.iota {dimensions = array<i32: 1>} : vector<8x8xi32>
      %130 = arith.cmpi sgt, %129, %128 : vector<8x8xi32>
      %cst_46 = arith.constant -1.000000e+30 : f32
      %cst_47 = arith.constant 0.000000e+00 : f32
      %131 = vector.broadcast %cst_46 : f32 to vector<8x8xf32>
      %132 = vector.broadcast %cst_47 : f32 to vector<8x8xf32>
      %133 = arith.select %130, %131, %132 : vector<8x8xi1>, vector<8x8xf32>
      %c0_48 = arith.constant 0 : index
      %c0_49 = arith.constant 0 : index
      %134 = vector.load %arg12[%c0_48, %c0_49] : memref<8x8xf32, #tpu.memory_space<vmem>>, vector<8x8xf32>
      tpu.vector_store %arg12[%c0_48, %c0_49], %133 {strides = array<i32>} : memref<8x8xf32, #tpu.memory_space<vmem>>, vector<8x8xf32>,
    } else {
    }
    %c0 = arith.constant 0 : index
    %c0_1 = arith.constant 0 : index
    %c0_2 = arith.constant 0 : index
    %3 = vector.load %arg7[%c0, %c0_1, %c0_2] : memref<1x8x128xf32, #tpu.memory_space<vmem>>, vector<1x8x128xf32>
    %4 = vector.shape_cast %3 : vector<1x8x128xf32> to vector<8x128xf32>
    %5 = vector.extract_strided_slice %4 {offsets = [0, 0], sizes = [1, 32], strides = [1, 1]} : vector<8x128xf32> to vector<1x32xf32>
    %6 = vector.extract_strided_slice %4 {offsets = [1, 0], sizes = [1, 32], strides = [1, 1]} : vector<8x128xf32> to vector<1x32xf32>
    %7 = vector.extract_strided_slice %4 {offsets = [2, 0], sizes = [1, 32], strides = [1, 1]} : vector<8x128xf32> to vector<1x32xf32>
    %8 = vector.extract_strided_slice %4 {offsets = [3, 0], sizes = [1, 32], strides = [1, 1]} : vector<8x128xf32> to vector<1x32xf32>
    %9 = vector.extract_strided_slice %4 {offsets = [4, 0], sizes = [1, 32], strides = [1, 1]} : vector<8x128xf32> to vector<1x32xf32>
    %10 = vector.extract_strided_slice %4 {offsets = [5, 0], sizes = [1, 32], strides = [1, 1]} : vector<8x128xf32> to vector<1x32xf32>
    %11 = vector.extract_strided_slice %4 {offsets = [6, 0], sizes = [1, 128], strides = [1, 1]} : vector<8x128xf32> to vector<1x128xf32>
    %12 = vector.extract_strided_slice %4 {offsets = [7, 0], sizes = [1, 96], strides = [1, 1]} : vector<8x128xf32> to vector<1x96xf32>
    %c0_3 = arith.constant 0 : index
    %c0_4 = arith.constant 0 : index
    %13 = vector.load %arg11[%c0_3, %c0_4] : memref<8x32xf32, #tpu.memory_space<vmem>>, vector<8x32xf32>
    %c0_5 = arith.constant 0 : index
    %c0_6 = arith.constant 0 : index
    %14 = vector.load %arg12[%c0_5, %c0_6] : memref<8x8xf32, #tpu.memory_space<vmem>>, vector<8x8xf32>
    %cst = arith.constant dense<0.000000e+00> : vector<8xf32>
    %15 = vector.multi_reduction <add>, %13, %cst [1] : vector<8x32xf32> to vector<8xf32>
    %16 = vector.shape_cast %15 : vector<8xf32> to vector<8x1xf32>
    %cst_7 = arith.constant 3.200000e+01 : f32
    %17 = vector.broadcast %cst_7 : f32 to vector<8x1xf32>
    %18 = arith.divf %16, %17 : vector<8x1xf32>
    %19 = vector.broadcast %18 : vector<8x1xf32> to vector<8x32xf32>
    %20 = arith.subf %13, %19 : vector<8x32xf32>
    %21 = arith.mulf %20, %20 : vector<8x32xf32>
    %cst_8 = arith.constant dense<0.000000e+00> : vector<8xf32>
    %22 = vector.multi_reduction <add>, %21, %cst_8 [1] : vector<8x32xf32> to vector<8xf32>
    %23 = vector.shape_cast %22 : vector<8xf32> to vector<8x1xf32>
    %cst_9 = arith.constant 3.200000e+01 : f32
    %24 = vector.broadcast %cst_9 : f32 to vector<8x1xf32>
    %25 = arith.divf %23, %24 : vector<8x1xf32>
    %26 = vector.broadcast %18 : vector<8x1xf32> to vector<8x32xf32>
    %27 = arith.subf %13, %26 : vector<8x32xf32>
    %cst_10 = arith.constant 9.99999974E-6 : f32
    %28 = vector.broadcast %cst_10 : f32 to vector<8x1xf32>
    %29 = arith.addf %25, %28 : vector<8x1xf32>
    %30 = math.rsqrt %29 : vector<8x1xf32>
    %31 = vector.broadcast %30 : vector<8x1xf32> to vector<8x32xf32>
    %32 = arith.mulf %27, %31 : vector<8x32xf32>
    %33 = vector.broadcast %5 : vector<1x32xf32> to vector<8x32xf32>
    %34 = arith.mulf %32, %33 : vector<8x32xf32>
    %35 = vector.broadcast %6 : vector<1x32xf32> to vector<8x32xf32>
    %36 = arith.addf %34, %35 : vector<8x32xf32>
    %37 = arith.truncf %36 : vector<8x32xf32> to vector<8x32xbf16>
    %c0_11 = arith.constant 0 : index
    %c0_12 = arith.constant 0 : index
    %c0_13 = arith.constant 0 : index
    %38 = vector.load %arg3[%c0_11, %c0_12, %c0_13] : memref<1x32x96xbf16, #tpu.memory_space<vmem>>, vector<1x32x96xbf16>
    %39 = vector.shape_cast %38 : vector<1x32x96xbf16> to vector<32x96xbf16>
    %cst_14 = arith.constant dense<0.000000e+00> : vector<8x96xf32>
    %40 = tpu.matmul %37, %39, %cst_14 {dimension_numbers = #tpu.dot_dimension_numbers<[1], [0], [0], [1], [0, 0, 1, 1], [], []>} : vector<8x32xbf16>, vector<32x96xbf16>, vector<8x96xf32> -> vector<8x96xf32>
    %41 = vector.broadcast %12 : vector<1x96xf32> to vector<8x96xf32>
    %42 = arith.addf %40, %41 : vector<8x96xf32>
    %43 = vector.extract_strided_slice %42 {offsets = [0, 0], sizes = [8, 32], strides = [1, 1]} : vector<8x96xf32> to vector<8x32xf32>
    %44 = vector.shape_cast %43 : vector<8x32xf32> to vector<8x4x8xf32>
    %45 = arith.truncf %44 : vector<8x4x8xf32> to vector<8x4x8xbf16>
    %46 = vector.extract_strided_slice %42 {offsets = [0, 32], sizes = [8, 32], strides = [1, 1]} : vector<8x96xf32> to vector<8x32xf32>
    %47 = vector.shape_cast %46 : vector<8x32xf32> to vector<8x4x8xf32>
    %48 = arith.truncf %47 : vector<8x4x8xf32> to vector<8x4x8xbf16>
    %49 = vector.extract_strided_slice %42 {offsets = [0, 64], sizes = [8, 32], strides = [1, 1]} : vector<8x96xf32> to vector<8x32xf32>
    %50 = vector.shape_cast %49 : vector<8x32xf32> to vector<8x4x8xf32>
    %51 = arith.truncf %50 : vector<8x4x8xf32> to vector<8x4x8xbf16>
    "tpu.trace_start"() <{level = 10 : i32, message = "qhd,khd->hqk"}> : () -> ()
    %cst_15 = arith.constant dense<0.000000e+00> : vector<4x8x8xf32>
    %52 = tpu.matmul %45, %48, %cst_15 {dimension_numbers = #tpu.dot_dimension_numbers<[2], [2], [0], [0], [0, 1, 0, 0, 1, 0], [1], [1]>} : vector<8x4x8xbf16>, vector<8x4x8xbf16>, vector<4x8x8xf32> -> vector<4x8x8xf32>
    "tpu.trace_stop"() : () -> ()
    %cst_16 = arith.constant 0.353553385 : f32
    %53 = vector.broadcast %cst_16 : f32 to vector<4x8x8xf32>
    %54 = arith.mulf %52, %53 : vector<4x8x8xf32>
    %55 = vector.shape_cast %14 : vector<8x8xf32> to vector<1x8x8xf32>
    %56 = vector.broadcast %55 : vector<1x8x8xf32> to vector<4x8x8xf32>
    %57 = arith.addf %54, %56 : vector<4x8x8xf32>
    %cst_17 = arith.constant dense<0xFF800000> : vector<4x8xf32>
    %58 = vector.multi_reduction <maximumf>, %57, %cst_17 [2] : vector<4x8x8xf32> to vector<4x8xf32>
    %59 = vector.shape_cast %58 : vector<4x8xf32> to vector<4x8x1xf32>
    %60 = vector.broadcast %59 : vector<4x8x1xf32> to vector<4x8x8xf32>
    %61 = arith.subf %57, %60 : vector<4x8x8xf32>
    %62 = math.exp %61 : vector<4x8x8xf32>
    %cst_18 = arith.constant dense<0.000000e+00> : vector<4x8xf32>
    %63 = vector.multi_reduction <add>, %62, %cst_18 [2] : vector<4x8x8xf32> to vector<4x8xf32>
    %64 = vector.shape_cast %63 : vector<4x8xf32> to vector<4x8x1xf32>
    %65 = tpu.reciprocal %64 {approx = true} : vector<4x8x1xf32> -> vector<4x8x1xf32>
    %66 = vector.broadcast %65 : vector<4x8x1xf32> to vector<4x8x8xf32>
    %67 = arith.mulf %62, %66 : vector<4x8x8xf32>
    %68 = arith.truncf %67 : vector<4x8x8xf32> to vector<4x8x8xbf16>
    "tpu.trace_start"() <{level = 10 : i32, message = "hqk,khd->qhd"}> : () -> ()
    %cst_19 = arith.constant dense<0.000000e+00> : vector<4x8x8xf32>
    %69 = tpu.matmul %51, %68, %cst_19 {dimension_numbers = #tpu.dot_dimension_numbers<[0], [2], [2], [1], [0, 1, 0, 2, 1, 1], [1], [0]>} : vector<8x4x8xbf16>, vector<4x8x8xbf16>, vector<4x8x8xf32> -> vector<4x8x8xf32>
    %70 = tpu.transpose %69, [2, 0, 1] : vector<4x8x8xf32> -> vector<8x4x8xf32>
    "tpu.trace_stop"() : () -> ()
    %71 = vector.shape_cast %70 : vector<8x4x8xf32> to vector<8x32xf32>
    %72 = arith.truncf %71 : vector<8x32xf32> to vector<8x32xbf16>
    %c0_20 = arith.constant 0 : index
    %c0_21 = arith.constant 0 : index
    %c0_22 = arith.constant 0 : index
    %73 = vector.load %arg4[%c0_20, %c0_21, %c0_22] : memref<1x32x32xbf16, #tpu.memory_space<vmem>>, vector<1x32x32xbf16>
    %74 = vector.shape_cast %73 : vector<1x32x32xbf16> to vector<32x32xbf16>
    %cst_23 = arith.constant dense<0.000000e+00> : vector<8x32xf32>
    %75 = tpu.matmul %72, %74, %cst_23 {dimension_numbers = #tpu.dot_dimension_numbers<[1], [0], [0], [1], [0, 0, 1, 1], [], []>} : vector<8x32xbf16>, vector<32x32xbf16>, vector<8x32xf32> -> vector<8x32xf32>
    %76 = vector.broadcast %9 : vector<1x32xf32> to vector<8x32xf32>
    %77 = arith.addf %75, %76 : vector<8x32xf32>
    %78 = arith.addf %13, %77 : vector<8x32xf32>
    %cst_24 = arith.constant dense<0.000000e+00> : vector<8xf32>
    %79 = vector.multi_reduction <add>, %78, %cst_24 [1] : vector<8x32xf32> to vector<8xf32>
    %80 = vector.shape_cast %79 : vector<8xf32> to vector<8x1xf32>
    %cst_25 = arith.constant 3.200000e+01 : f32
    %81 = vector.broadcast %cst_25 : f32 to vector<8x1xf32>
    %82 = arith.divf %80, %81 : vector<8x1xf32>
    %83 = vector.broadcast %82 : vector<8x1xf32> to vector<8x32xf32>
    %84 = arith.subf %78, %83 : vector<8x32xf32>
    %85 = arith.mulf %84, %84 : vector<8x32xf32>
    %cst_26 = arith.constant dense<0.000000e+00> : vector<8xf32>
    %86 = vector.multi_reduction <add>, %85, %cst_26 [1] : vector<8x32xf32> to vector<8xf32>
    %87 = vector.shape_cast %86 : vector<8xf32> to vector<8x1xf32>
    %cst_27 = arith.constant 3.200000e+01 : f32
    %88 = vector.broadcast %cst_27 : f32 to vector<8x1xf32>
    %89 = arith.divf %87, %88 : vector<8x1xf32>
    %90 = vector.broadcast %82 : vector<8x1xf32> to vector<8x32xf32>
    %91 = arith.subf %78, %90 : vector<8x32xf32>
    %cst_28 = arith.constant 9.99999974E-6 : f32
    %92 = vector.broadcast %cst_28 : f32 to vector<8x1xf32>
    %93 = arith.addf %89, %92 : vector<8x1xf32>
    %94 = math.rsqrt %93 : vector<8x1xf32>
    %95 = vector.broadcast %94 : vector<8x1xf32> to vector<8x32xf32>
    %96 = arith.mulf %91, %95 : vector<8x32xf32>
    %97 = vector.broadcast %7 : vector<1x32xf32> to vector<8x32xf32>
    %98 = arith.mulf %96, %97 : vector<8x32xf32>
    %99 = vector.broadcast %8 : vector<1x32xf32> to vector<8x32xf32>
    %100 = arith.addf %98, %99 : vector<8x32xf32>
    %101 = arith.truncf %100 : vector<8x32xf32> to vector<8x32xbf16>
    %c0_29 = arith.constant 0 : index
    %c0_30 = arith.constant 0 : index
    %c0_31 = arith.constant 0 : index
    %102 = vector.load %arg5[%c0_29, %c0_30, %c0_31] : memref<1x32x128xbf16, #tpu.memory_space<vmem>>, vector<1x32x128xbf16>
    %103 = vector.shape_cast %102 : vector<1x32x128xbf16> to vector<32x128xbf16>
    %cst_32 = arith.constant dense<0.000000e+00> : vector<8x128xf32>
    %104 = tpu.matmul %101, %103, %cst_32 {dimension_numbers = #tpu.dot_dimension_numbers<[1], [0], [0], [1], [0, 0, 1, 1], [], []>} : vector<8x32xbf16>, vector<32x128xbf16>, vector<8x128xf32> -> vector<8x128xf32>
    %105 = vector.broadcast %11 : vector<1x128xf32> to vector<8x128xf32>
    %106 = arith.addf %104, %105 : vector<8x128xf32>
    %cst_33 = arith.constant 1.702000e+00 : f32
    %107 = vector.broadcast %cst_33 : f32 to vector<8x128xf32>
    %108 = arith.mulf %107, %106 : vector<8x128xf32>
    %109 = arith.negf %108 : vector<8x128xf32>
    %110 = math.exp %109 : vector<8x128xf32>
    %cst_34 = arith.constant 1.000000e+00 : f32
    %111 = vector.broadcast %cst_34 : f32 to vector<8x128xf32>
    %112 = arith.addf %111, %110 : vector<8x128xf32>
    %113 = arith.divf %111, %112 : vector<8x128xf32>
    %114 = arith.mulf %106, %113 : vector<8x128xf32>
    %115 = arith.truncf %114 : vector<8x128xf32> to vector<8x128xbf16>
    %c0_35 = arith.constant 0 : index
    %c0_36 = arith.constant 0 : index
    %c0_37 = arith.constant 0 : index
    %116 = vector.load %arg6[%c0_35, %c0_36, %c0_37] : memref<1x128x32xbf16, #tpu.memory_space<vmem>>, vector<1x128x32xbf16>
    %117 = vector.shape_cast %116 : vector<1x128x32xbf16> to vector<128x32xbf16>
    %cst_38 = arith.constant dense<0.000000e+00> : vector<8x32xf32>
    %118 = tpu.matmul %115, %117, %cst_38 {dimension_numbers = #tpu.dot_dimension_numbers<[1], [0], [0], [1], [0, 0, 1, 1], [], []>} : vector<8x128xbf16>, vector<128x32xbf16>, vector<8x32xf32> -> vector<8x32xf32>
    %119 = arith.addf %78, %118 : vector<8x32xf32>
    %120 = vector.broadcast %10 : vector<1x32xf32> to vector<8x32xf32>
    %121 = arith.addf %119, %120 : vector<8x32xf32>
    %c0_39 = arith.constant 0 : index
    %c0_40 = arith.constant 0 : index
    %122 = vector.load %arg11[%c0_39, %c0_40] : memref<8x32xf32, #tpu.memory_space<vmem>>, vector<8x32xf32>
    tpu.vector_store %arg11[%c0_39, %c0_40], %121 {strides = array<i32>} : memref<8x32xf32, #tpu.memory_space<vmem>>, vector<8x32xf32>,
    %c1_i32 = arith.constant 1 : i32
    %123 = arith.cmpi eq, %arg1, %c1_i32 : i32
    %124 = arith.extui %123 : i1 to i32
    %c0_i32_41 = arith.constant 0 : i32
    %125 = arith.cmpi ne, %124, %c0_i32_41 : i32
    scf.if %125 {
      %c0_42 = arith.constant 0 : index
      %c0_43 = arith.constant 0 : index
      %126 = vector.load %arg8[%c0_42, %c0_43] : memref<2x32xf32, #tpu.memory_space<vmem>>, vector<1x32xf32>
      %c1 = arith.constant 1 : index
      %c0_44 = arith.constant 0 : index
      %127 = vector.load %arg8[%c1, %c0_44] : memref<2x32xf32, #tpu.memory_space<vmem>>, vector<1x32xf32>
      %cst_45 = arith.constant dense<0.000000e+00> : vector<8xf32>
      %128 = vector.multi_reduction <add>, %121, %cst_45 [1] : vector<8x32xf32> to vector<8xf32>
      %129 = vector.shape_cast %128 : vector<8xf32> to vector<8x1xf32>
      %cst_46 = arith.constant 3.200000e+01 : f32
      %130 = vector.broadcast %cst_46 : f32 to vector<8x1xf32>
      %131 = arith.divf %129, %130 : vector<8x1xf32>
      %132 = vector.broadcast %131 : vector<8x1xf32> to vector<8x32xf32>
      %133 = arith.subf %121, %132 : vector<8x32xf32>
      %134 = arith.mulf %133, %133 : vector<8x32xf32>
      %cst_47 = arith.constant dense<0.000000e+00> : vector<8xf32>
      %135 = vector.multi_reduction <add>, %134, %cst_47 [1] : vector<8x32xf32> to vector<8xf32>
      %136 = vector.shape_cast %135 : vector<8xf32> to vector<8x1xf32>
      %cst_48 = arith.constant 3.200000e+01 : f32
      %137 = vector.broadcast %cst_48 : f32 to vector<8x1xf32>
      %138 = arith.divf %136, %137 : vector<8x1xf32>
      %139 = vector.broadcast %131 : vector<8x1xf32> to vector<8x32xf32>
      %140 = arith.subf %121, %139 : vector<8x32xf32>
      %cst_49 = arith.constant 9.99999974E-6 : f32
      %141 = vector.broadcast %cst_49 : f32 to vector<8x1xf32>
      %142 = arith.addf %138, %141 : vector<8x1xf32>
      %143 = math.rsqrt %142 : vector<8x1xf32>
      %144 = vector.broadcast %143 : vector<8x1xf32> to vector<8x32xf32>
      %145 = arith.mulf %140, %144 : vector<8x32xf32>
      %146 = vector.broadcast %126 : vector<1x32xf32> to vector<8x32xf32>
      %147 = arith.mulf %145, %146 : vector<8x32xf32>
      %148 = vector.broadcast %127 : vector<1x32xf32> to vector<8x32xf32>
      %149 = arith.addf %147, %148 : vector<8x32xf32>
      %150 = arith.truncf %149 : vector<8x32xf32> to vector<8x32xbf16>
      %c0_50 = arith.constant 0 : index
      %c0_51 = arith.constant 0 : index
      %151 = vector.load %arg9[%c0_50, %c0_51] : memref<32x32xbf16, #tpu.memory_space<vmem>>, vector<32x32xbf16>
      %cst_52 = arith.constant dense<0.000000e+00> : vector<8x32xf32>
      %152 = tpu.matmul %150, %151, %cst_52 {dimension_numbers = #tpu.dot_dimension_numbers<[1], [0], [0], [1], [0, 0, 1, 1], [], []>} : vector<8x32xbf16>, vector<32x32xbf16>, vector<8x32xf32> -> vector<8x32xf32>
      %c0_53 = arith.constant 0 : index
      %c0_54 = arith.constant 0 : index
      %153 = vector.load %arg10[%c0_53, %c0_54] : memref<8x32xf32, #tpu.memory_space<vmem>>, vector<8x32xf32>
      tpu.vector_store %arg10[%c0_53, %c0_54], %152 {strides = array<i32>} : memref<8x32xf32, #tpu.memory_space<vmem>>, vector<8x32xf32>,
    } else {
    }
    return
  }
  func.func @transform_0(%arg0: i32, %arg1: i32) -> (i32, i32) {
    %c0_i32 = arith.constant 0 : i32
    %c0_i32_0 = arith.constant 0 : i32
    return %arg0, %c0_i32 : i32, i32
  }
  func.func @transform_1(%arg0: i32, %arg1: i32) -> (i32, i32, i32) {
    %c0_i32 = arith.constant 0 : i32
    %c0_i32_0 = arith.constant 0 : i32
    %c0_i32_1 = arith.constant 0 : i32
    return %arg1, %c0_i32, %c0_i32_0 : i32, i32, i32
  }
  func.func @transform_2(%arg0: i32, %arg1: i32) -> (i32, i32, i32) {
    %c0_i32 = arith.constant 0 : i32
    %c0_i32_0 = arith.constant 0 : i32
    %c0_i32_1 = arith.constant 0 : i32
    return %arg1, %c0_i32, %c0_i32_0 : i32, i32, i32
  }
  func.func @transform_3(%arg0: i32, %arg1: i32) -> (i32, i32, i32) {
    %c0_i32 = arith.constant 0 : i32
    %c0_i32_0 = arith.constant 0 : i32
    %c0_i32_1 = arith.constant 0 : i32
    return %arg1, %c0_i32, %c0_i32_0 : i32, i32, i32
  }
  func.func @transform_4(%arg0: i32, %arg1: i32) -> (i32, i32, i32) {
    %c0_i32 = arith.constant 0 : i32
    %c0_i32_0 = arith.constant 0 : i32
    %c0_i32_1 = arith.constant 0 : i32
    return %arg1, %c0_i32, %c0_i32_0 : i32, i32, i32
  }
  func.func @transform_5(%arg0: i32, %arg1: i32) -> (i32, i32, i32) {
    %c0_i32 = arith.constant 0 : i32
    %c0_i32_0 = arith.constant 0 : i32
    %c0_i32_1 = arith.constant 0 : i32
    return %arg1, %c0_i32, %c0_i32_0 : i32, i32, i32
  }
  func.func @transform_6(%arg0: i32, %arg1: i32) -> (i32, i32) {
    %c0_i32 = arith.constant 0 : i32
    %c0_i32_0 = arith.constant 0 : i32
    %c0_i32_1 = arith.constant 0 : i32
    return %c0_i32, %c0_i32_0 : i32, i32
  }
  func.func @transform_7(%arg0: i32, %arg1: i32) -> (i32, i32) {
    %c0_i32 = arith.constant 0 : i32
    %c0_i32_0 = arith.constant 0 : i32
    %c0_i32_1 = arith.constant 0 : i32
    return %c0_i32, %c0_i32_0 : i32, i32
  }
  func.func @transform_8(%arg0: i32, %arg1: i32) -> (i32, i32) {
    %c0_i32 = arith.constant 0 : i32
    %c0_i32_0 = arith.constant 0 : i32
    return %arg0, %c0_i32 : i32, i32
  }
}

</mosaic_0001>

<bundles_post_ra>
// kernel: tpu_custom_call.1
= control target key start
LH: loop header
LB: loop body
LE: loop exit
PB: predicated region body
PF: predicated region fallthrough
CT: control target
= control target key end

     0   :  { %s3390_s0 = inlined_call_operand.vmem [shape: f32[16,32], index: 0, kind: input, shape index: {}]   ;;  %s3391_s1 = inlined_call_operand.vmem [shape: bf16[2,32,96], index: 1, kind: input, shape index: {}]   ;;  %s3392_s2 = inlined_call_operand.vmem [shape: bf16[2,32,32], index: 2, kind: input, shape index: {}]   ;;  %s3393_s3 = inlined_call_operand.vmem [shape: bf16[2,32,128], index: 3, kind: input, shape index: {}]   ;;  %s3394_s4 = inlined_call_operand.vmem [shape: bf16[2,128,32], index: 4, kind: input, shape index: {}]   ;;  %s3395_s5 = inlined_call_operand.vmem [shape: f32[2,8,128], index: 5, kind: input, shape index: {}]   ;;  %s3396_s6 = inlined_call_operand.vmem [shape: f32[2,32], index: 6, kind: input, shape index: {}]   ;;  %s3397_s7 = inlined_call_operand.vmem [shape: bf16[32,32], index: 7, kind: input, shape index: {}]   ;;  %s3398_s8 = inlined_call_operand.hbm [shape: f32[16,32], index: 8, kind: output, shape index: {}]  }
   0x1   :  { %3408 = sst [smem:[#allocation16_spill]] %s3390_s0 }
   0x2   :  { %13 = vsyncpa [#allocation5], 0 }
   0x3   :  { %15 = vsyncpa [#allocation5 + $0x1], 0  ;;  %s2915_s27 = smov 0   ;;  %s2917_s28 = smov 0  }
   0x4   :  { %s2919_s29 = smov 0   ;;  %s2921_s30 = smov 0  }
   0x5   :  { %s2923_s9 = smov 0   ;;  %s2925_s10 = smov 0  }
   0x6   :  { %s2927_s11 = smov 0   ;;  %s2929_s12 = smov 0  }
   0x7 LB: > { %3409 = sst [smem:[#allocation7_spill]] %s2828_s27  ;;  %s2444_s13 = sadd.s32 4294967295, %s2856_s12   ;;  %s2856_s12 = sphi %s2929_s12, %s21_s12   ;;  %s2852_s11 = sphi %s2927_s11, %s3430_s11   ;;  %s2848_s10 = sphi %s2925_s10, %s3429_s10   ;;  %s2844_s9 = sphi %s2923_s9, %s3428_s9   ;;  %s2840_s30 = sphi %s2921_s30, %s3427_s30   ;;  %s2836_s29 = sphi %s2919_s29, %s3426_s29   ;;  %s2832_s28 = sphi %s2917_s28, %s3432_s28   ;;  %s2828_s27 = sphi %s2915_s27, %s3431_s27  }
   0x8   : > { %3410 = sst [smem:[#allocation8_spill]] %s2836_s29  ;;  %s2445_s14 = sadd.s32 4294967294, %s2856_s12  }
   0x9   : > { %3411 = sst [smem:[#allocation9_spill]] %s2848_s10  ;;  %s30_s15 = sadd.s32 1, %s2848_s10 }
   0xa   : > { %3412 = sst [smem:[#allocation10_spill]] %s2852_s11  ;;  %p31_p0 = scmp.ge.s32.totalorder %s30_s15, 2 }
   0xb   : > { %3413 = sst [smem:[#allocation11_spill]] %s2856_s12  ;;  %s33_s16 = sadd.s32 1, %s2852_s11 }
   0xc   : > { %p248_p1 = scmp.ne.s32.totalorder %s2836_s29, %s2832_s28  ;;  %p249_p2 = scmp.eq.s32.totalorder %s2444_s13, 3 }
   0xd   : > { %s3434_s15 = smov (%p31_p0, %s30_s15), 0  ;;  %s3436_s16 = smov (!%p31_p0, %s33_s16), %s2852_s11 }
   0xe   : > { %3414 = sst [smem:[#allocation12_spill]] %s3434_s15  ;;  %p2964_p3 = por %p249_p2, %p248_p1 }
   0xf   : > { %p254_p4 = scmp.ne.s32.totalorder %s2832_s28, %s2828_s27  ;;  %p35_p5 = scmp.ge.s32.totalorder %s3436_s16, 2 }
  0x10   : > { %p255_p6 = scmp.eq.s32.totalorder %s2445_s14, 3  ;;  %p2448_p7 = scmp.ge.s32.totalorder %s2856_s12, 1 }
  0x11   : > { %p325_p8 = scmp.lt.s32.totalorder %s2856_s12, 5  ;;  %s3438_s16 = smov (%p35_p5, %s3436_s16), 0 }
  0x12   : > { %3416 = sst [smem:[#allocation13_spill]] %s3438_s16  ;;  %p2974_p9 = por %p255_p6, %p254_p4 }
  0x13   : > { %p326_p10 = pnand %p2448_p7, %p325_p8  ;;  %s235_s19 = ssub.s32 %s2852_s11, %s3438_s16 }
  0x14   : > { %s3417_s18 = scalar_select %p2974_p9, 1, 0 }
  0x15   : > { %s238_s20 = sadd.s32 1, %s2836_s29  ;;  %p236_p11 = scmp.eq.s32.totalorder %s235_s19, 0 }
  0x16   : > { %3418 = sst [smem:[#allocation14_spill]] %s3417_s18  ;;  %329 = sbr.rel (%p326_p10) target bundleno = 3267 (0xcc3), region = 52 }
  0x17   : > { %s2982_s21 = scalar_select %p236_p11, %s2836_s29, %s238_s20  }
  0x18   : > { %s3402_s22 = sand.u32 (!%p326_p10), 1, %s2832_s28   ;;  %p382_p12 = scmp.lt.s32.totalorder (!%p326_p10), %s2844_s9, 1 }
  0x19   : > { %3419 = sst [smem:[#allocation15_spill]] %s2982_s21  ;;  %s2988_s23 = sshll.u32 (!%p326_p10), %s3402_s22, 3 }
  0x1a   : > { %p386_p13 = scmp.lt.s32.totalorder (!%p326_p10), %s2840_s30, 1  ;;  %s3420_s0 = sld [smem:[#allocation16_spill]] (!%p326_p10) }
  0x1b   : > { %s383_s24 = scalar_select %p382_p12, %s2844_s9, 1 }
  0x1c   : > { %s387_s25 = scalar_select %p386_p13, %s2840_s30, 1 }
  0x1d   : > { %s2450_s26 = sshll.u32 %s383_s24, 3  ;;  %s381_s10 = scalar_lea.vmem [#allocation4], %s2988_s23 }
  0x1e   : > { %s2543_s20 = sshll.u32 %s387_s25, 4  ;;  %s2546_s24 = sshll.u32 %s387_s25, 6 }
  0x1f   : > { %s2999_s11 = scalar_lea.vmem %s3391_s1, %s2543_s20  ;;  %s3004_s22 = scalar_lea.vmem %s3392_s2, %s2543_s20 }
  0x20   : > { %s385_s19 = scalar_lea.vmem %s3420_s0, %s2450_s26  ;;  %s3009_s27 = scalar_lea.vmem %s3393_s3, %s2543_s20 }
  0x21   : > { %s3014_s26 = scalar_lea.vmem %s3394_s4, %s2546_s24  ;;  %s2459_s14 = sshll.u32 %s387_s25, 3 }
  0x22   : > { %s3019_s0 = scalar_lea.vmem %s3395_s5, %s2459_s14  ;;  %p2460_p0 = scmp.ne.s32.totalorder %s2840_s30, 0 }
  0x24   : > { %414 = sbr.rel (%p2460_p0) target bundleno = 48 (0x30), region = 56 }
  0x29   : > { %v415_v0 = vld [vmem:[%s385_s19] sm:$0xff]  ;;  %vm416_vm0 = vcmask 261120   ;;  %v418_v1 = vlaneseq  ;;  %vm424_vm1 = vcmask 64512   ;;  %v2858_v4 = vmov 0.0  }
  0x2a   : > { %417 = vst.msk [vmem:[#allocation2] sm:$0xff] %vm416_vm0, %v415_v0 }
  0x2b   : > { %v419_v2 = vshrl.u32 %v418_v1, 7  ;;  %v421_v3 = vand.u32 127, %v418_v1 }
  0x2d   : > { %vm422_vm2 = vcmp.gt.s32.totalorder %v421_v3, %v419_v2 }
  0x2e   : > { %v423_v5 = vsel %vm422_vm2, -1e+30, %v2858_v4 }
  0x2f   : > { %425 = vst.msk [vmem:[#allocation3] sm:$0xff] %vm424_vm1, %v423_v5 }
  0x30 PF: > { %vm429_vm3 = vcmask 261120   ;;  %v2859_v8 = vmov 32.0   ;;  %v2548_v20 = vld [vmem:[%s2999_s11 + $0x8] sm:$0xff]  ;;  %v2547_v21 = vld [vmem:[%s2999_s11] sm:$0xff]  ;;  %s2860_s29 = smov 112   ;;  %s2861_s11 = smov 120  }
  0x31   : > { %v427_v6 = vld [vmem:[#allocation2] sm:$0xff]  ;;  %2730 = vrcp.f32 %v2859_v8  ;;  %490 = vmatpush.bf16.msra.mxu0 %v2548_v20  ;;  %s2862_s12 = smov 104   ;;  %s2863_s18 = smov 96   ;;  %v2864_v51 = vmov 1983009808   ;;  %vm508_vm8 = vcmask 1047556  }
  0x32   : > { %v430_v7 = vsel %vm429_vm3, %v427_v6, 0.0  ;;  %v426_v30 = vld [vmem:[%s3019_s0] sm:$0xff]  ;;  %v513_v52 = vunpack.c.l.s4 %v2864_v51  ;;  %v2865_v59 = vmov 1934713408   ;;  %s2866_s21 = smov 64   ;;  %vm1177_vm9 = vcmask 1043456  }
  0x33   : > { %431 = vadd.xlane.f32.xlu0 %v430_v7  ;;  %v459_v32 = vperm.slane %v426_v30, 0  ;;  %v461_v35 = vperm.slane %v426_v30, 1  ;;  %v468_v39 = vperm.slane %v426_v30, 7  ;;  %v537_v60 = vunpack.c.l.s4 %v2865_v59  ;;  %s2867_s25 = smov 24   ;;  %s2868_s19 = smov 16  }
  0x34   : > { %v3054_v58 = vunpack.c.0.s8 %v513_v52  ;;  %vm1173_vm10 = vcmask 64512   ;;  %s2869_s20 = smov 8   ;;  %vm2030_vm11 = vcmask 130048   ;;  %vm2032_vm12 = vcmask 195584   ;;  %p2529_p1 = scmp.ne.s32.totalorder %s2840_s30, 1 }
  0x35   : > { %491 = vmatpush.bf16.msra.mxu0 %v2547_v21  ;;  %v3063_v8 = vunpack.c.0.s8 %v537_v60 }
  0x37   : > { %v2731_v9 = vpop.eup %2730 }
  0x38   : > { %v434_v10 = vmul.f32 32.0, %v2731_v9  ;;  %vm438_vm4 = vweird.f32 %v2731_v9 }
  0x3a   : > { %v435_v11 = vsub.f32 1.0, %v434_v10 }
  0x3c   : > { %v436_v12 = vmul.f32 %v2731_v9, %v435_v11 }
  0x3e   : > { %v437_v13 = vadd.f32 %v2731_v9, %v436_v12 }
  0x40   : > { %v3024_v14 = vsel %vm438_vm4, %v2731_v9, %v437_v13 }
  0xa6   : > { %v432_v15 = vpop.xlane.xlu0 %431 }
  0xa7   : > { %v440_v16 = vmul.f32 %v3024_v14, %v432_v15 }
  0xa9   : > { %v441_v17 = vsub.f32 %v427_v6, %v440_v16 }
  0xab   : > { %v442_v18 = vmul.f32 %v441_v17, %v441_v17 }
  0xad   : > { %v443_v19 = vsel %vm429_vm3, %v442_v18, 0.0 }
  0xae   : > { %444 = vadd.xlane.f32.xlu0 %v443_v19 }
 0x121   : > { %v445_v22 = vpop.xlane.xlu0 %444 }
 0x122   : > { %v446_v23 = vmul.f32 %v445_v22, %v3024_v14 }
 0x124   : > { %v447_v24 = vadd.f32 1e-05, %v446_v23 }
 0x126   : > { %2732 = vrsqrt.f32 %v447_v24  ;;  %vm454_vm6 = vweird.f32 %v447_v24 }
 0x12c   : > { %v2733_v25 = vpop.eup %2732 }
 0x12d   : > { %v449_v26 = vmul.f32 %v2733_v25, %v447_v24  ;;  %vm455_vm5 = vweird.f32 %v2733_v25 }
 0x12e   : > { %vm456_vm7 = vmor %vm454_vm6, %vm455_vm5 }
 0x12f   : > { %v450_v27 = vmul.f32 %v2733_v25, %v449_v26 }
 0x131   : > { %v451_v28 = vmul.f32 0.5, %v450_v27 }
 0x133   : > { %v452_v29 = vsub.f32 1.5, %v451_v28 }
 0x135   : > { %v453_v31 = vmul.f32 %v2733_v25, %v452_v29 }
 0x137   : > { %v457_v33 = vsel %vm456_vm7, %v2733_v25, %v453_v31 }
 0x138   : > { %v458_v34 = vmul.f32 %v457_v33, %v441_v17 }
 0x13a   : > { %v460_v36 = vmul.f32 %v459_v32, %v458_v34 }
 0x13c   : > { %v462_v37 = vadd.f32 %v461_v35, %v460_v36 }
 0x13e   : > { %v463_v38 = vpack.c.bf16 %v462_v37, %v462_v37 }
 0x140   : > { %2469 = vmatmul.msk.bf16.vlgmr.msra.gmra.mxu0 %vm429_vm3, %v463_v38 }
 0x1bd   : > { %v493_v40 = vpop.f32.mrf.mxu0 }
 0x1be   : > { %v3033_v41 = vadd.f32 %v493_v40, %v468_v39 }
 0x1c0   : > { %501 = vrot.lane.b32.xlu2 %v3033_v41, %s2860_s29  ;;  %498 = vrot.lane.b32.xlu1 %v3033_v41, %s2861_s11 }
 0x1c5   : > { %v495_v42 = vpop.f32.mrf.mxu0 }
 0x1c8   : > { %504 = vrot.lane.b32.xlu1 %v3033_v41, %s2862_s12 }
 0x21a   : > { %v3045_v45 = vpop.permute.xlu2 %501 }
 0x232   : > { %v3038_v43 = vpop.permute.xlu1 %498 }
 0x233   : > { %v3042_v44 = vpack.i.bf16 %v3033_v41, %v3038_v43 }
 0x235   : > { %2649 = vrot.lane.b32.xlu2 %v3042_v44, %s2863_s18 }
 0x23a   : > { %v3047_v46 = vpop.permute.xlu1 %504 }
 0x23b   : > { %v3051_v47 = vpack.i.bf16 %v3045_v45, %v3047_v46 }
 0x23d   : > { %2654 = vrot.lane.b32.xlu0 %v3051_v47, %s2863_s18 }
 0x28f   : > { %v2650_v48 = vpop.permute.xlu2 %2649 }
 0x290   : > { %v2652_v49 = vunpack.i.h.bf16 %v2650_v48  ;;  %v2651_v50 = vunpack.i.l.bf16 %v2650_v48 }
 0x292   : > { %v586_v54 = vrot.slane %v2652_v49, 4  ;;  %v598_v55 = vrot.slane %v2651_v50, 4 }
 0x2af   : > { %v2655_v53 = vpop.permute.xlu0 %2654 }
 0x2b0   : > { %v2657_v56 = vunpack.i.h.bf16 %v2655_v53  ;;  %v2656_v57 = vunpack.i.l.bf16 %v2655_v53 }
 0x2b2   : > { %v584_v61 = vrot.slane %v2657_v56, 4  ;;  %v587_v62 = vsel %vm508_vm8, %v2657_v56, %v586_v54  ;;  %v596_v63 = vrot.slane %v2656_v57, 4  ;;  %v599_v0 = vsel %vm508_vm8, %v2656_v57, %v598_v55 }
 0x2b3   : > { %v595_v1 = vperm.slane %v587_v62, %v3054_v58  ;;  %v607_v2 = vperm.slane %v599_v0, %v3054_v58 }
 0x2b4   : > { %v585_v3 = vsel %vm508_vm8, %v584_v61, %v2652_v49  ;;  %v597_v4 = vsel %vm508_vm8, %v596_v63, %v2651_v50 }
 0x2b5   : > { %v622_v5 = vrot.slane %v595_v1, 4  ;;  %v603_v6 = vperm.slane %v597_v4, %v3054_v58  ;;  %v620_v7 = vrot.slane %v607_v2, 4  ;;  %v591_v9 = vperm.slane %v585_v3, %v3054_v58 }
 0x2b7   : > { %v608_v10 = vrot.slane %v603_v6, 4  ;;  %v623_v11 = vsel %vm508_vm8, %v607_v2, %v622_v5  ;;  %v621_v12 = vsel %vm508_vm8, %v620_v7, %v595_v1  ;;  %v610_v26 = vrot.slane %v591_v9, 4 }
 0x2b8   : > { %v631_v13 = vperm.slane %v623_v11, %v3063_v8  ;;  %v627_v15 = vperm.slane %v621_v12, %v3063_v8 }
 0x2b9   : > { %v609_v16 = vsel %vm508_vm8, %v608_v10, %v591_v9  ;;  %v611_v31 = vsel %vm508_vm8, %v603_v6, %v610_v26 }
 0x2ba   : > { %v638_v17 = vrot.slane %v631_v13, 4  ;;  %v636_v18 = vrot.slane %v627_v15, 4  ;;  %v615_v19 = vperm.slane %v609_v16, %v3063_v8  ;;  %v646_v22 = vpack.c.bf16 %v631_v13, %v631_v13 }
 0x2bb   : > { %v644_v27 = vpack.c.bf16 %v627_v15, %v627_v15  ;;  %v619_v32 = vperm.slane %v611_v31, %v3063_v8 }
 0x2bc   : > { %v639_v20 = vsel %vm508_vm8, 0.0, %v638_v17  ;;  %v637_v21 = vsel %vm508_vm8, 0.0, %v636_v18  ;;  %v632_v25 = vrot.slane %v615_v19, 4  ;;  %v640_v29 = vpack.c.bf16 %v615_v19, %v615_v19 }
 0x2bd   : > { %v647_v23 = vpack.c.bf16 %v639_v20, %v639_v20  ;;  %v645_v24 = vpack.c.bf16 %v637_v21, %v637_v21  ;;  %v634_v33 = vrot.slane %v619_v32, 4  ;;  %v642_v35 = vpack.c.bf16 %v619_v32, %v619_v32 }
 0x2be   : > { %v633_v28 = vsel %vm508_vm8, 0.0, %v632_v25 }
 0x2bf   : > { %2661 = vxpose.binary.xlu0.c.b16.start.end [1/2] (short) (narrow) %v647_v23, %v646_v22, 16  ;;  %v641_v30 = vpack.c.bf16 %v633_v28, %v633_v28  ;;  %v635_v34 = vsel %vm508_vm8, 0.0, %v634_v33 }
 0x2c0   : > { %2658 = vxpose.binary.xlu1.c.b16.start.end [1/2] (short) (narrow) %v645_v24, %v644_v27, 16  ;;  %v643_v36 = vpack.c.bf16 %v635_v34, %v635_v34 }
 0x2c1   : > { %2664 = vxpose.binary.xlu2.c.b16.start.end [1/2] (short) (narrow) %v641_v30, %v640_v29, 16 }
 0x2d1   : > { %2667 = vxpose.binary.xlu2.c.b16.start.end [1/2] (short) (narrow) %v643_v36, %v642_v35, 16 }
 0x362   : > { %v2665_v37 = vpop.trf.xlu2 }
 0x36a   : > { %v2666_v38 = vpop.trf.xlu2 }
 0x36b   : > { %v2662_v39 = vpop.trf.xlu0 }
 0x36c   : > { %v2659_v40 = vpop.trf.xlu1  ;;  %v911_v49 = vrot.slane %v2662_v39, 4  ;;  %v507_v39 = vrot.slane %v3045_v45, 4 }
 0x36d   : > { %v905_v42 = vrot.slane %v2659_v40, 4 }
 0x36f   : > { %v906_v48 = vsel %vm508_vm8, %v905_v42, %v2665_v37  ;;  %v522_v42 = vrot.slane %v3038_v43, 4 }
 0x370   : > { %v910_v50 = vperm.slane %v906_v48, %v3054_v58  ;;  %v520_v48 = vrot.slane %v3047_v46, 4 }
 0x372   : > { %v2668_v51 = vpop.trf.xlu2  ;;  %v919_v54 = vrot.slane %v910_v50, 4 }
 0x373   : > { %v912_v52 = vsel %vm508_vm8, %v911_v49, %v2668_v51  ;;  %v2663_v57 = vpop.trf.xlu0  ;;  %v523_v49 = vsel %vm508_vm8, %v3047_v46, %v522_v42  ;;  %v521_v51 = vsel %vm508_vm8, %v520_v48, %v3038_v43 }
 0x374   : > { %v2660_v53 = vpop.trf.xlu1  ;;  %v916_v55 = vperm.slane %v912_v52, %v3054_v58  ;;  %v939_v62 = vrot.slane %v2663_v57, 4 }
 0x375   : > { %v933_v56 = vrot.slane %v2660_v53, 4  ;;  %v527_v53 = vperm.slane %v521_v51, %v3054_v58 }
 0x376   : > { %v917_v59 = vrot.slane %v916_v55, 4  ;;  %v920_v60 = vsel %vm508_vm8, %v916_v55, %v919_v54 }
 0x377   : > { %v934_v61 = vsel %vm508_vm8, %v933_v56, %v2666_v38  ;;  %v928_v1 = vperm.slane %v920_v60, %v3063_v8  ;;  %v510_v38 = vrot.slane %v3033_v41, 4  ;;  %v532_v57 = vrot.slane %v527_v53, 4 }
 0x378   : > { %v918_v63 = vsel %vm508_vm8, %v917_v59, %v910_v50  ;;  %v938_v0 = vperm.slane %v934_v61, %v3054_v58 }
 0x379   : > { %v924_v2 = vperm.slane %v918_v63, %v3063_v8  ;;  %v931_v7 = vrot.slane %v928_v1, 4  ;;  %v981_v15 = vshrl.u32 %v928_v1, 16  ;;  %v511_v40 = vsel %vm508_vm8, %v3045_v45, %v510_v38 }
 0x37a   : > { %v2669_v3 = vpop.trf.xlu2  ;;  %v947_v5 = vrot.slane %v938_v0, 4  ;;  %v519_v50 = vperm.slane %v511_v40, %v3054_v58 }
 0x37b   : > { %v940_v4 = vsel %vm508_vm8, %v939_v62, %v2669_v3  ;;  %v929_v11 = vrot.slane %v924_v2, 4  ;;  %v932_v18 = vsel %vm508_vm8, 0, %v931_v7  ;;  %v965_v35 = vshrl.u32 %v924_v2, 16 }
 0x37c   : > { %v944_v6 = vperm.slane %v940_v4, %v3054_v58  ;;  %v989_v25 = vshrl.u32 %v932_v18, 16  ;;  %v546_v45 = vrot.slane %v519_v50, 4 }
 0x37d   : > { %v930_v20 = vsel %vm508_vm8, 0, %v929_v11 }
 0x37e   : > { %v945_v9 = vrot.slane %v944_v6, 4  ;;  %v948_v10 = vsel %vm508_vm8, %v944_v6, %v947_v5  ;;  %v973_v30 = vshrl.u32 %v930_v20, 16 }
 0x37f   : > { %v956_v12 = vperm.slane %v948_v10, %v3063_v8 }
 0x380   : > { %v946_v13 = vsel %vm508_vm8, %v945_v9, %v938_v0 }
 0x381   : > { %v952_v16 = vperm.slane %v946_v13, %v3063_v8  ;;  %v982_v17 = vshrl.u32 %v956_v12, 16  ;;  %v959_v19 = vrot.slane %v956_v12, 4  ;;  %v979_v21 = vpack.i.b16 %v956_v12, %v928_v1 }
 0x383   : > { %v983_v22 = vpack.i.b16 %v982_v17, %v981_v15  ;;  %v960_v23 = vsel %vm508_vm8, 0, %v959_v19  ;;  %v957_v24 = vrot.slane %v952_v16, 4  ;;  %v966_v34 = vshrl.u32 %v952_v16, 16 }
 0x384   : > { %v990_v26 = vshrl.u32 %v960_v23, 16  ;;  %v987_v28 = vpack.i.b16 %v960_v23, %v932_v18  ;;  %v963_v36 = vpack.i.b16 %v952_v16, %v924_v2 }
 0x385   : > { %2670 = vxpose.binary.xlu2.c.b16.start.end [1/2] (short) (narrow) %v983_v22, %v979_v21, 16  ;;  %v958_v27 = vsel %vm508_vm8, 0, %v957_v24  ;;  %v967_v37 = vpack.i.b16 %v966_v34, %v965_v35 }
 0x386   : > { %v991_v29 = vpack.i.b16 %v990_v26, %v989_v25  ;;  %v974_v31 = vshrl.u32 %v958_v27, 16  ;;  %v971_v32 = vpack.i.b16 %v958_v27, %v930_v20 }
 0x388   : > { %2676 = vxpose.binary.xlu1.c.b16.start.end [1/2] (short) (narrow) %v991_v29, %v987_v28, 16  ;;  %v975_v33 = vpack.i.b16 %v974_v31, %v973_v30 }
 0x38a   : > { %2673 = vxpose.binary.xlu0.c.b16.start.end [1/2] (short) (narrow) %v975_v33, %v971_v32, 16 }
 0x398   : > { %2679 = vxpose.binary.xlu1.c.b16.start.end [1/2] (short) (narrow) %v967_v37, %v963_v36, 16 }
 0x3ee   : > { %2688 = vrot.lane.b32.xlu2 %v3051_v47, %s2866_s21  ;;  %v509_v47 = vsel %vm508_vm8, %v507_v39, %v3033_v41 }
 0x3ef   : > { %v515_v52 = vperm.slane %v509_v47, %v3054_v58 }
 0x3f1   : > { %v534_v56 = vrot.slane %v515_v52, 4  ;;  %v533_v62 = vsel %vm508_vm8, %v532_v57, %v515_v52 }
 0x3f2   : > { %v539_v0 = vperm.slane %v533_v62, %v3063_v8 }
 0x3f3   : > { %v535_v59 = vsel %vm508_vm8, %v527_v53, %v534_v56 }
 0x3f4   : > { %v543_v60 = vperm.slane %v535_v59, %v3063_v8  ;;  %v556_v5 = vrot.slane %v539_v0, 4  ;;  %v564_v29 = vpack.c.bf16 %v539_v0, %v539_v0 }
 0x3f6   : > { %v558_v1 = vrot.slane %v543_v60, 4  ;;  %v557_v17 = vsel %vm508_vm8, 0.0, %v556_v5  ;;  %v566_v18 = vpack.c.bf16 %v543_v60, %v543_v60 }
 0x3f7   : > { %v565_v24 = vpack.c.bf16 %v557_v17, %v557_v17 }
 0x3f8   : > { %2683 = vrot.lane.b32.xlu0 %v3042_v44, %s2866_s21  ;;  %v531_v44 = vperm.slane %v523_v49, %v3054_v58  ;;  %v559_v7 = vsel %vm508_vm8, 0.0, %v558_v1 }
 0x3f9   : > { %v567_v16 = vpack.c.bf16 %v559_v7, %v559_v7 }
 0x3fa   : > { %v544_v54 = vrot.slane %v531_v44, 4  ;;  %v547_v55 = vsel %vm508_vm8, %v531_v44, %v546_v45 }
 0x3fb   : > { %v555_v46 = vperm.slane %v547_v55, %v3063_v8 }
 0x3fc   : > { %v545_v41 = vsel %vm508_vm8, %v544_v54, %v519_v50 }
 0x3fd   : > { %v551_v43 = vperm.slane %v545_v41, %v3063_v8  ;;  %v562_v61 = vrot.slane %v555_v46, 4  ;;  %v570_v9 = vpack.c.bf16 %v555_v46, %v555_v46 }
 0x3ff   : > { %v560_v2 = vrot.slane %v551_v43, 4  ;;  %v563_v3 = vsel %vm508_vm8, 0.0, %v562_v61  ;;  %v568_v19 = vpack.c.bf16 %v551_v43, %v551_v43  ;;  %v731_v20 = vrot.slane %v570_v9, 4 }
 0x400   : > { %v571_v4 = vpack.c.bf16 %v563_v3, %v563_v3 }
 0x401   : > { %v561_v6 = vsel %vm508_vm8, 0.0, %v560_v2  ;;  %v724_v27 = vrot.slane %v568_v19, 4  ;;  %v732_v30 = vsel %vm508_vm8, %v731_v20, %v566_v18 }
 0x402   : > { %v569_v12 = vpack.c.bf16 %v561_v6, %v561_v6  ;;  %v751_v13 = vrot.slane %v571_v4, 4  ;;  %v736_v37 = vperm.slane %v732_v30, %v3054_v58 }
 0x403   : > { %v726_v40 = vsel %vm508_vm8, %v724_v27, %v564_v29 }
 0x404   : > { %v745_v23 = vrot.slane %v569_v12, 4  ;;  %v752_v25 = vsel %vm508_vm8, %v751_v13, %v567_v16  ;;  %v730_v51 = vperm.slane %v726_v40, %v3054_v58  ;;  %v737_v52 = vrot.slane %v736_v37, 4 }
 0x405   : > { %v756_v32 = vperm.slane %v752_v25, %v3054_v58 }
 0x406   : > { %v746_v35 = vsel %vm508_vm8, %v745_v23, %v565_v24  ;;  %v738_v46 = vsel %vm508_vm8, %v737_v52, %v730_v51 }
 0x407   : > { %v750_v48 = vperm.slane %v746_v35, %v3054_v58  ;;  %v757_v49 = vrot.slane %v756_v32, 4  ;;  %v742_v61 = vperm.slane %v738_v46, %v3063_v8 }
 0x409   : > { %v758_v54 = vsel %vm508_vm8, %v757_v49, %v750_v48  ;;  %v743_v5 = vrot.slane %v742_v61, 4  ;;  %v768_v17 = vshrl.u32 %v742_v61, 16 }
 0x40a   : > { %v762_v41 = vperm.slane %v758_v54, %v3063_v8 }
 0x40c   : > { %v763_v0 = vrot.slane %v762_v41, 4  ;;  %v767_v16 = vpack.i.b16 %v762_v41, %v742_v61 }
 0x40e   : > { %v764_v18 = vsel %vm508_vm8, 0, %v763_v0 }
 0x40f   : > { %v775_v25 = vshrl.u32 %v764_v18, 16 }
 0x426   : > { %v2671_v21 = vpop.trf.xlu2 }
 0x427   : > { %v1121_v26 = vrot.slane %v2671_v21, 4 }
 0x42e   : > { %v2672_v50 = vpop.trf.xlu2 }
 0x42f   : > { %v1141_v44 = vrot.slane %v2672_v50, 4 }
 0x434   : > { %v2677_v63 = vpop.trf.xlu1 }
 0x435   : > { %v1127_v11 = vrot.slane %v2677_v63, 4 }
 0x436   : > { %v2674_v10 = vpop.trf.xlu0 }
 0x437   : > { %v1128_v22 = vsel %vm508_vm8, %v1127_v11, %v2674_v10  ;;  %v769_v10 = vshrl.u32 %v762_v41, 16 }
 0x438   : > { %v1132_v28 = vperm.slane %v1128_v22, %v3054_v58  ;;  %v744_v22 = vsel %vm508_vm8, 0, %v743_v5 }
 0x439   : > { %v770_v21 = vpack.i.b16 %v769_v10, %v768_v17  ;;  %v773_v24 = vpack.i.b16 %v764_v18, %v744_v22  ;;  %v774_v27 = vshrl.u32 %v744_v22, 16 }
 0x43a   : > { %v1133_v38 = vrot.slane %v1132_v28, 4 }
 0x43b   : > { %v776_v30 = vpack.i.b16 %v775_v25, %v774_v27 }
 0x43c   : > { %v2678_v15 = vpop.trf.xlu1 }
 0x43d   : > { %v1147_v31 = vrot.slane %v2678_v15, 4 }
 0x43e   : > { %v2675_v33 = vpop.trf.xlu0 }
 0x43f   : > { %v1148_v42 = vsel %vm508_vm8, %v1147_v31, %v2675_v33 }
 0x440   : > { %v1152_v45 = vperm.slane %v1148_v42, %v3054_v58 }
 0x442   : > { %v1153_v57 = vrot.slane %v1152_v45, 4 }
 0x444   : > { %v2680_v34 = vpop.trf.xlu1 }
 0x445   : > { %v1122_v36 = vsel %vm508_vm8, %v1121_v26, %v2680_v34 }
 0x446   : > { %v1126_v39 = vperm.slane %v1122_v36, %v3054_v58 }
 0x448   : > { %v1134_v47 = vsel %vm508_vm8, %v1133_v38, %v1126_v39  ;;  %v2689_v26 = vpop.permute.xlu2 %2688 }
 0x449   : > { %v1138_v53 = vperm.slane %v1134_v47, %v3063_v8  ;;  %v2691_v28 = vunpack.i.h.bf16 %v2689_v26  ;;  %v2690_v29 = vunpack.i.l.bf16 %v2689_v26 }
 0x44b   : > { %v1139_v60 = vrot.slane %v1138_v53, 4  ;;  %v1164_v63 = vshrl.u32 %v1138_v53, 16  ;;  %v660_v32 = vrot.slane %v2691_v28, 4  ;;  %v672_v33 = vrot.slane %v2690_v29, 4 }
 0x44c   : > { %v2681_v55 = vpop.trf.xlu1 }
 0x44d   : > { %v1142_v56 = vsel %vm508_vm8, %v1141_v44, %v2681_v55  ;;  %v1140_v3 = vsel %vm508_vm8, 0, %v1139_v60 }
 0x44e   : > { %v1146_v59 = vperm.slane %v1142_v56, %v3054_v58  ;;  %v1170_v12 = vshrl.u32 %v1140_v3, 16 }
 0x450   : > { %v1154_v43 = vsel %vm508_vm8, %v1153_v57, %v1146_v59 }
 0x451   : > { %v1158_v62 = vperm.slane %v1154_v43, %v3063_v8 }
 0x453   : > { %v1163_v1 = vpack.i.b16 %v1158_v62, %v1138_v53  ;;  %v1165_v2 = vshrl.u32 %v1158_v62, 16  ;;  %v1159_v4 = vrot.slane %v1158_v62, 4 }
 0x455   : > { %v1179_v6 = vsel %vm1177_vm9, %v1163_v1, 0  ;;  %v1166_v7 = vpack.i.b16 %v1165_v2, %v1164_v63  ;;  %v1160_v9 = vsel %vm508_vm8, 0, %v1159_v4  ;;  %v428_v2 = vld [vmem:[#allocation3] sm:$0xff] }
 0x456   : > { %1188 = vmatpush.bf16.msra.mxu1 %v1179_v6  ;;  %v1169_v11 = vpack.i.b16 %v1160_v9, %v1140_v3  ;;  %v1171_v13 = vshrl.u32 %v1160_v9, 16 }
 0x457   : > { %v1198_v15 = vsel %vm1177_vm9, %v1166_v7, 0 }
 0x458   : > { %1207 = vmatpush.bf16.msra.mxu2 %v1198_v15  ;;  %v1217_v19 = vsel %vm1177_vm9, %v1169_v11, 0  ;;  %v1172_v20 = vpack.i.b16 %v1171_v13, %v1170_v12 }
 0x459   : > { %2470 = vmatmul.msk.bf16.vlgmr.msra.gmra.mxu1 %vm1173_vm10, %v767_v16  ;;  %1226 = vmatpush.bf16.msra.mxu3 %v1217_v19 }
 0x45a   : > { %v1236_v23 = vsel %vm1177_vm9, %v1172_v20, 0 }
 0x45b   : > { %2471 = vmatmul.msk.bf16.vlgmr.msra.gmra.mxu2 %vm1173_vm10, %v770_v21  ;;  %1245 = vmatpush.bf16.msrb.mxu1 %v1236_v23 }
 0x45c   : > { %2472 = vmatmul.msk.bf16.vlgmr.msra.gmra.mxu3 %vm1173_vm10, %v773_v24 }
 0x469   : > { %2473 = vmatmul.msk.bf16.vlgmr.msrb.gmra.mxu1 %vm1173_vm10, %v776_v30 }
 0x46a   : > { %v2684_v31 = vpop.permute.xlu0 %2683 }
 0x46b   : > { %v2686_v34 = vunpack.i.h.bf16 %v2684_v31  ;;  %v2685_v35 = vunpack.i.l.bf16 %v2684_v31 }
 0x46d   : > { %v661_v36 = vsel %vm508_vm8, %v660_v32, %v2686_v34  ;;  %v662_v37 = vrot.slane %v2686_v34, 4  ;;  %v673_v38 = vsel %vm508_vm8, %v672_v33, %v2685_v35  ;;  %v674_v39 = vrot.slane %v2685_v35, 4 }
 0x46e   : > { %v679_v40 = vperm.slane %v673_v38, %v3054_v58  ;;  %v667_v49 = vperm.slane %v661_v36, %v3054_v58 }
 0x46f   : > { %v663_v42 = vsel %vm508_vm8, %v2691_v28, %v662_v37  ;;  %v675_v48 = vsel %vm508_vm8, %v2690_v29, %v674_v39 }
 0x470   : > { %v671_v50 = vperm.slane %v663_v42, %v3054_v58  ;;  %v683_v47 = vperm.slane %v675_v48, %v3054_v58  ;;  %v684_v44 = vrot.slane %v679_v40, 4  ;;  %v686_v46 = vrot.slane %v667_v49, 4 }
 0x472   : > { %v698_v51 = vrot.slane %v671_v50, 4  ;;  %v696_v52 = vrot.slane %v683_v47, 4  ;;  %v685_v45 = vsel %vm508_vm8, %v684_v44, %v667_v49  ;;  %v687_v60 = vsel %vm508_vm8, %v679_v40, %v686_v46 }
 0x473   : > { %v695_v43 = vperm.slane %v687_v60, %v3063_v8  ;;  %v691_v24 = vperm.slane %v685_v45, %v3063_v8 }
 0x474   : > { %v697_v53 = vsel %vm508_vm8, %v696_v52, %v671_v50  ;;  %v699_v54 = vsel %vm508_vm8, %v683_v47, %v698_v51 }
 0x475   : > { %v703_v55 = vperm.slane %v697_v53, %v3063_v8  ;;  %v710_v61 = vrot.slane %v695_v43, 4  ;;  %v718_v63 = vpack.c.bf16 %v695_v43, %v695_v43  ;;  %v708_v25 = vrot.slane %v691_v24, 4 }
 0x476   : > { %v707_v27 = vperm.slane %v699_v54, %v3063_v8  ;;  %v716_v28 = vpack.c.bf16 %v691_v24, %v691_v24 }
 0x477   : > { %v712_v56 = vrot.slane %v703_v55, 4  ;;  %v720_v59 = vpack.c.bf16 %v703_v55, %v703_v55  ;;  %v711_v62 = vsel %vm508_vm8, 0.0, %v710_v61  ;;  %v709_v26 = vsel %vm508_vm8, 0.0, %v708_v25 }
 0x478   : > { %v719_v0 = vpack.c.bf16 %v711_v62, %v711_v62  ;;  %v717_v29 = vpack.c.bf16 %v709_v26, %v709_v26  ;;  %v714_v30 = vrot.slane %v707_v27, 4  ;;  %v722_v32 = vpack.c.bf16 %v707_v27, %v707_v27 }
 0x479   : > { %v713_v57 = vsel %vm508_vm8, 0.0, %v712_v56 }
 0x47a   : > { %v721_v41 = vpack.c.bf16 %v713_v57, %v713_v57  ;;  %v715_v31 = vsel %vm508_vm8, 0.0, %v714_v30 }
 0x47b   : > { %v723_v33 = vpack.c.bf16 %v715_v31, %v715_v31 }
 0x47c   : > { %2692 = vxpose.binary.xlu1.c.b16.start.end [1/2] (short) (narrow) %v721_v41, %v720_v59, 16 }
 0x48c   : > { %2701 = vxpose.binary.xlu1.c.b16.start.end [1/2] (short) (narrow) %v719_v0, %v718_v63, 16 }
 0x4d6   : > { %v1190_v1 = vpop.f32.mrf.mxu1 }
 0x4d7   : > { %v1251_v3 = vmul.f32 0.35355338, %v1190_v1 }
 0x4d9   : > { %v1255_v4 = vadd.f32 %v1251_v3, %v428_v2 }
 0x4db   : > { %v1259_v5 = vsel %vm1173_vm10, %v1255_v4, -inf }
 0x4dc   : > { %1260 = vmax.xlane.f32.xlu2 %v1259_v5 }
 0x4de   : > { %v1192_v6 = vpop.f32.mrf.mxu1  ;;  %v1209_v7 = vpop.f32.mrf.mxu2 }
 0x4df   : > { %v1252_v9 = vmul.f32 0.35355338, %v1209_v7  ;;  %v1228_v10 = vpop.f32.mrf.mxu3 }
 0x4e0   : > { %v1253_v12 = vmul.f32 0.35355338, %v1228_v10 }
 0x4e1   : > { %v1256_v11 = vadd.f32 %v1252_v9, %v428_v2 }
 0x4e2   : > { %v1257_v18 = vadd.f32 %v1253_v12, %v428_v2 }
 0x4e3   : > { %v1262_v13 = vsel %vm1173_vm10, %v1256_v11, -inf }
 0x4e4   : > { %1263 = vmax.xlane.f32.xlu0 %v1262_v13  ;;  %v1265_v20 = vsel %vm1173_vm10, %v1257_v18, -inf }
 0x4e6   : > { %v1211_v15 = vpop.f32.mrf.mxu2  ;;  %v1247_v16 = vpop.f32.mrf.mxu1 }
 0x4e7   : > { %v1230_v17 = vpop.f32.mrf.mxu3  ;;  %v1254_v19 = vmul.f32 0.35355338, %v1247_v16 }
 0x4e9   : > { %v1258_v22 = vadd.f32 %v1254_v19, %v428_v2 }
 0x4eb   : > { %v1268_v23 = vsel %vm1173_vm10, %v1258_v22, -inf }
 0x4ec   : > { %1266 = vmax.xlane.f32.xlu1 %v1265_v20 }
 0x4ee   : > { %v1249_v21 = vpop.f32.mrf.mxu1 }
 0x4f4   : > { %1269 = vmax.xlane.f32.xlu1 %v1268_v23 }
 0x505   : > { %2695 = vxpose.binary.xlu2.c.b16.start.end [1/2] (short) (narrow) %v717_v29, %v716_v28, 16 }
 0x50d   : > { %2698 = vxpose.binary.xlu0.c.b16.start.end [1/2] (short) (narrow) %v723_v33, %v722_v32, 16 }
 0x528   : > { %v2693_v34 = vpop.trf.xlu1 }
 0x529   : > { %v1435_v43 = vrot.slane %v2693_v34, 4 }
 0x530   : > { %v2694_v35 = vpop.trf.xlu1 }
 0x531   : > { %v1463_v2 = vrot.slane %v2694_v35, 4 }
 0x538   : > { %v2702_v36 = vpop.trf.xlu1 }
 0x540   : > { %v2703_v37 = vpop.trf.xlu1 }
 0x54f   : > { %v1261_v52 = vpop.xlane.xlu2 %1260 }
 0x550   : > { %v1271_v53 = vsub.f32 %v1255_v4, %v1261_v52 }
 0x552   : > { %v1275_v54 = vmul.f32 1.442695, %v1271_v53 }
 0x557   : > { %v1264_v38 = vpop.xlane.xlu0 %1263 }
 0x558   : > { %v1272_v39 = vsub.f32 %v1256_v11, %v1264_v38 }
 0x55a   : > { %v1277_v40 = vmul.f32 1.442695, %v1272_v39 }
 0x55c   : > { %2734 = vpow2.f32 %v1277_v40 }
 0x55f   : > { %v1267_v42 = vpop.xlane.xlu1 %1266 }
 0x560   : > { %v1273_v49 = vsub.f32 %v1257_v18, %v1267_v42 }
 0x562   : > { %v3188_v48 = vpop.eup %2734  ;;  %v1279_v47 = vmul.f32 1.442695, %v1273_v49 }
 0x563   : > { %v1286_v50 = vsel %vm1173_vm10, %v3188_v48, 0.0 }
 0x564   : > { %1287 = vadd.xlane.f32.xlu1 %v1286_v50  ;;  %2736 = vpow2.f32 %v1279_v47 }
 0x567   : > { %v1270_v44 = vpop.xlane.xlu1 %1269 }
 0x568   : > { %v1274_v51 = vsub.f32 %v1258_v22, %v1270_v44 }
 0x56a   : > { %v1281_v45 = vmul.f32 1.442695, %v1274_v51  ;;  %v3192_v55 = vpop.eup %2736 }
 0x56b   : > { %v1289_v57 = vsel %vm1173_vm10, %v3192_v55, 0.0 }
 0x56c   : > { %2738 = vpow2.f32 %v1281_v45 }
 0x56d   : > { %2740 = vpow2.f32 %v1275_v54 }
 0x572   : > { %v3194_v56 = vpop.eup %2738 }
 0x573   : > { %v1292_v46 = vsel %vm1173_vm10, %v3194_v56, 0.0  ;;  %v3200_v59 = vpop.eup %2740 }
 0x574   : > { %1293 = vadd.xlane.f32.xlu1 %v1292_v46  ;;  %v1283_v41 = vsel %vm1173_vm10, %v3200_v59, 0.0 }
 0x576   : > { %1290 = vadd.xlane.f32.xlu2 %v1289_v57 }
 0x57e   : > { %1284 = vadd.xlane.f32.xlu0 %v1283_v41 }
 0x5a6   : > { %v2696_v60 = vpop.trf.xlu2 }
 0x5a7   : > { %v1436_v61 = vsel %vm508_vm8, %v1435_v43, %v2696_v60 }
 0x5a8   : > { %v1440_v62 = vperm.slane %v1436_v61, %v3054_v58 }
 0x5aa   : > { %v1449_v4 = vrot.slane %v1440_v62, 4 }
 0x5ae   : > { %v2697_v1 = vpop.trf.xlu2 }
 0x5af   : > { %v1464_v6 = vsel %vm508_vm8, %v1463_v2, %v2697_v1 }
 0x5b0   : > { %v1468_v10 = vperm.slane %v1464_v6, %v3054_v58 }
 0x5b2   : > { %v1477_v18 = vrot.slane %v1468_v10, 4 }
 0x5b9   : > { %v2699_v63 = vpop.trf.xlu0 }
 0x5ba   : > { %v1441_v0 = vrot.slane %v2699_v63, 4 }
 0x5bc   : > { %v1442_v3 = vsel %vm508_vm8, %v1441_v0, %v2702_v36 }
 0x5bd   : > { %v1446_v5 = vperm.slane %v1442_v3, %v3054_v58 }
 0x5bf   : > { %v1447_v7 = vrot.slane %v1446_v5, 4  ;;  %v1450_v9 = vsel %vm508_vm8, %v1446_v5, %v1449_v4 }
 0x5c0   : > { %v1458_v12 = vperm.slane %v1450_v9, %v3063_v8 }
 0x5c1   : > { %v1448_v11 = vsel %vm508_vm8, %v1447_v7, %v1440_v62  ;;  %v2700_v13 = vpop.trf.xlu0 }
 0x5c2   : > { %v1469_v15 = vrot.slane %v2700_v13, 4  ;;  %v1454_v16 = vperm.slane %v1448_v11, %v3063_v8  ;;  %v1461_v20 = vrot.slane %v1458_v12, 4  ;;  %v1511_v26 = vshrl.u32 %v1458_v12, 16 }
 0x5c4   : > { %v1470_v17 = vsel %vm508_vm8, %v1469_v15, %v2703_v37  ;;  %v1459_v23 = vrot.slane %v1454_v16, 4  ;;  %v1462_v27 = vsel %vm508_vm8, 0, %v1461_v20  ;;  %v1495_v33 = vshrl.u32 %v1454_v16, 16 }
 0x5c5   : > { %v1474_v19 = vperm.slane %v1470_v17, %v3054_v58  ;;  %v1519_v39 = vshrl.u32 %v1462_v27, 16 }
 0x5c6   : > { %v1460_v32 = vsel %vm508_vm8, 0, %v1459_v23 }
 0x5c7   : > { %v1475_v21 = vrot.slane %v1474_v19, 4  ;;  %v1478_v22 = vsel %vm508_vm8, %v1474_v19, %v1477_v18  ;;  %v1503_v50 = vshrl.u32 %v1460_v32, 16 }
 0x5c8   : > { %v1486_v24 = vperm.slane %v1478_v22, %v3063_v8 }
 0x5c9   : > { %v1476_v25 = vsel %vm508_vm8, %v1475_v21, %v1468_v10 }
 0x5ca   : > { %v1482_v28 = vperm.slane %v1476_v25, %v3063_v8  ;;  %v1509_v29 = vpack.i.b16 %v1486_v24, %v1458_v12  ;;  %v1512_v30 = vshrl.u32 %v1486_v24, 16  ;;  %v1489_v31 = vrot.slane %v1486_v24, 4 }
 0x5cc   : > { %v1513_v34 = vpack.i.b16 %v1512_v30, %v1511_v26  ;;  %v1490_v35 = vsel %vm508_vm8, 0, %v1489_v31  ;;  %v1487_v36 = vrot.slane %v1482_v28, 4  ;;  %v1493_v37 = vpack.i.b16 %v1482_v28, %v1454_v16 }
 0x5cd   : > { %v1517_v38 = vpack.i.b16 %v1490_v35, %v1462_v27  ;;  %v1520_v40 = vshrl.u32 %v1490_v35, 16  ;;  %v1496_v42 = vshrl.u32 %v1482_v28, 16 }
 0x5ce   : > { %2710 = vxpose.binary.xlu0.c.b16.start.end [1/2] (short) (narrow) %v1513_v34, %v1509_v29, 16  ;;  %v1488_v49 = vsel %vm508_vm8, 0, %v1487_v36 }
 0x5cf   : > { %v1521_v47 = vpack.i.b16 %v1520_v40, %v1519_v39  ;;  %v1501_v44 = vpack.i.b16 %v1488_v49, %v1460_v32  ;;  %v1504_v51 = vshrl.u32 %v1488_v49, 16  ;;  %v1497_v52 = vpack.i.b16 %v1496_v42, %v1495_v33 }
 0x5d1   : > { %2704 = vxpose.binary.xlu1.c.b16.start.end [1/2] (short) (narrow) %v1521_v47, %v1517_v38, 16  ;;  %v1505_v45 = vpack.i.b16 %v1504_v51, %v1503_v50 }
 0x5d3   : > { %2707 = vxpose.binary.xlu2.c.b16.start.end [1/2] (short) (narrow) %v1505_v45, %v1501_v44, 16 }
 0x5d7   : > { %v1288_v53 = vpop.xlane.xlu1 %1287 }
 0x5d8   : > { %2742 = vrcp.f32 %v1288_v53 }
 0x5de   : > { %v2743_v54 = vpop.eup %2742 }
 0x5df   : > { %v1300_v46 = vmul.f32 %v2743_v54, %v3188_v48 }
 0x5e1   : > { %v1304_v57 = vpack.c.bf16 %v1300_v46, %v1300_v46 }
 0x5e3   : > { %2713 = vxpose.binary.xlu2.c.b16.start.end [1/2] (short) (narrow) %v1497_v52, %v1493_v37, 16  ;;  %v1726_v41 = vsel %vm1173_vm10, %v1304_v57, 0 }
 0x5e4   : > { %1735 = vmatpush.bf16.xpose.msrb.mxu3 %v1726_v41 }
 0x5e7   : > { %v1294_v60 = vpop.xlane.xlu1 %1293 }
 0x5e8   : > { %2744 = vrcp.f32 %v1294_v60 }
 0x5e9   : > { %v1291_v43 = vpop.xlane.xlu2 %1290 }
 0x5ea   : > { %2746 = vrcp.f32 %v1291_v43 }
 0x5ee   : > { %v2745_v61 = vpop.eup %2744 }
 0x5ef   : > { %v1302_v62 = vmul.f32 %v2745_v61, %v3194_v56 }
 0x5f0   : > { %v2747_v63 = vpop.eup %2746 }
 0x5f1   : > { %v1285_v0 = vpop.xlane.xlu0 %1284  ;;  %v1301_v1 = vmul.f32 %v2747_v63, %v3192_v55  ;;  %v1306_v2 = vpack.c.bf16 %v1302_v62, %v1302_v62 }
 0x5f2   : > { %2748 = vrcp.f32 %v1285_v0 }
 0x5f3   : > { %v1305_v3 = vpack.c.bf16 %v1301_v1, %v1301_v1  ;;  %v1764_v4 = vsel %vm1173_vm10, %v1306_v2, 0 }
 0x5f5   : > { %v1745_v48 = vsel %vm1173_vm10, %v1305_v3, 0 }
 0x5f6   : > { %1754 = vmatpush.bf16.xpose.msra.mxu1 %v1745_v48 }
 0x5f8   : > { %v2749_v5 = vpop.eup %2748 }
 0x5f9   : > { %v1299_v6 = vmul.f32 %v2749_v5, %v3200_v59 }
 0x5fb   : > { %v1303_v7 = vpack.c.bf16 %v1299_v6, %v1299_v6 }
 0x5fd   : > { %v1707_v9 = vsel %vm1173_vm10, %v1303_v7, 0 }
 0x5fe   : > { %1773 = vmatpush.bf16.xpose.msrb.mxu1 %v1764_v4  ;;  %1716 = vmatpush.bf16.xpose.msrb.mxu2 %v1707_v9 }
 0x674   : > { %v2708_v56 = vpop.trf.xlu2 }
 0x67a   : > { %v2711_v11 = vpop.trf.xlu0 }
 0x67b   : > { %v1651_v15 = vrot.slane %v2711_v11, 4 }
 0x67c   : > { %v2709_v10 = vpop.trf.xlu2 }
 0x67d   : > { %v2705_v55 = vpop.trf.xlu1 }
 0x67e   : > { %v1657_v12 = vrot.slane %v2705_v55, 4 }
 0x680   : > { %v1658_v13 = vsel %vm508_vm8, %v1657_v12, %v2708_v56 }
 0x681   : > { %v1662_v16 = vperm.slane %v1658_v13, %v3054_v58 }
 0x682   : > { %v2712_v21 = vpop.trf.xlu0 }
 0x683   : > { %v1663_v22 = vrot.slane %v1662_v16, 4  ;;  %v1671_v24 = vrot.slane %v2712_v21, 4 }
 0x684   : > { %v2714_v17 = vpop.trf.xlu2 }
 0x685   : > { %v1652_v18 = vsel %vm508_vm8, %v1651_v15, %v2714_v17  ;;  %v2706_v19 = vpop.trf.xlu1 }
 0x686   : > { %v1656_v59 = vperm.slane %v1652_v18, %v3054_v58  ;;  %v1677_v20 = vrot.slane %v2706_v19, 4 }
 0x688   : > { %v1678_v23 = vsel %vm508_vm8, %v1677_v20, %v2709_v10  ;;  %v1664_v25 = vsel %vm508_vm8, %v1663_v22, %v1656_v59 }
 0x689   : > { %v1682_v26 = vperm.slane %v1678_v23, %v3054_v58  ;;  %v1668_v28 = vperm.slane %v1664_v25, %v3063_v8 }
 0x68b   : > { %v1683_v30 = vrot.slane %v1682_v26, 4  ;;  %v1669_v33 = vrot.slane %v1668_v28, 4  ;;  %v1694_v37 = vshrl.u32 %v1668_v28, 16 }
 0x68c   : > { %v2715_v27 = vpop.trf.xlu2 }
 0x68d   : > { %v1672_v29 = vsel %vm508_vm8, %v1671_v24, %v2715_v27  ;;  %v1670_v40 = vsel %vm508_vm8, 0, %v1669_v33 }
 0x68e   : > { %v1676_v31 = vperm.slane %v1672_v29, %v3054_v58  ;;  %v1700_v47 = vshrl.u32 %v1670_v40, 16 }
 0x690   : > { %v1684_v32 = vsel %vm508_vm8, %v1683_v30, %v1676_v31 }
 0x691   : > { %v1688_v34 = vperm.slane %v1684_v32, %v3063_v8 }
 0x693   : > { %v1689_v35 = vrot.slane %v1688_v34, 4  ;;  %v1693_v36 = vpack.i.b16 %v1688_v34, %v1668_v28  ;;  %v1695_v38 = vshrl.u32 %v1688_v34, 16 }
 0x695   : > { %2474 = vmatmul.msk.bf16.vlgmr.msrb.gmra.mxu2 %vm1173_vm10, %v1693_v36  ;;  %v1696_v39 = vpack.i.b16 %v1695_v38, %v1694_v37  ;;  %v1690_v42 = vsel %vm508_vm8, 0, %v1689_v35 }
 0x696   : > { %v1699_v49 = vpack.i.b16 %v1690_v42, %v1670_v40  ;;  %v1701_v50 = vshrl.u32 %v1690_v42, 16 }
 0x697   : > { %2475 = vmatmul.msk.bf16.vlgmr.msrb.gmra.mxu3 %vm1173_vm10, %v1696_v39 }
 0x698   : > { %2476 = vmatmul.msk.bf16.vlgmr.msra.gmra.mxu1 %vm1173_vm10, %v1699_v49  ;;  %v1702_v44 = vpack.i.b16 %v1701_v50, %v1700_v47 }
 0x6a8   : > { %2477 = vmatmul.msk.bf16.vlgmr.msrb.gmra.mxu1 %vm1173_vm10, %v1702_v44 }
 0x715   : > { %v1756_v51 = vpop.f32.mrf.mxu1 }
 0x718   : > { %v1718_v52 = vpop.f32.mrf.mxu2 }
 0x719   : > { %v2716_v45 = vpack.i.bf16 %v1718_v52, %v1756_v51 }
 0x71a   : > { %v1737_v53 = vpop.f32.mrf.mxu3 }
 0x71b   : > { %2717 = vxpose.xlu0.b32.start.end [1/1] (short) (narrow) %v2716_v45, 8 }
 0x71d   : > { %v1758_v54 = vpop.f32.mrf.mxu1 }
 0x720   : > { %v1720_v46 = vpop.f32.mrf.mxu2 }
 0x722   : > { %v1739_v57 = vpop.f32.mrf.mxu3 }
 0x725   : > { %v1775_v41 = vpop.f32.mrf.mxu1 }
 0x726   : > { %v2723_v60 = vpack.i.bf16 %v1737_v53, %v1775_v41 }
 0x728   : > { %2724 = vxpose.xlu1.b32.start.end [1/1] (short) (narrow) %v2723_v60, 8 }
 0x72d   : > { %v1777_v43 = vpop.f32.mrf.mxu1 }
 0x7bf   : > { %v2718_v61 = vpop.trf.xlu0 }
 0x7c0   : > { %v2722_v62 = vunpack.i.h.bf16 %v2718_v61  ;;  %v2719_v63 = vunpack.i.l.bf16 %v2718_v61 }
 0x7c2   : > { %v1909_v0 = vrot.slane %v2722_v62, 4  ;;  %v1907_v1 = vrot.slane %v2719_v63, 4 }
 0x7c4   : > { %v1908_v2 = vsel %vm508_vm8, %v1907_v1, %v2722_v62  ;;  %v1910_v3 = vsel %vm508_vm8, %v2719_v63, %v1909_v0 }
 0x7c5   : > { %v1914_v6 = vperm.slane %v1908_v2, %v3054_v58  ;;  %v1918_v7 = vperm.slane %v1910_v3, %v3054_v58  ;;  %v2550_v3 = vld [vmem:[%s3004_s22 + $0x8] sm:$0xff] }
 0x7c6   : > { %2061 = vmatpush.bf16.msra.mxu2 %v2550_v3 }
 0x7c7   : > { %v1933_v55 = vrot.slane %v1914_v6, 4  ;;  %v1945_v12 = vrot.slane %v1918_v7, 4 }
 0x7cc   : > { %v2725_v48 = vpop.trf.xlu1 }
 0x7cd   : > { %v2729_v4 = vunpack.i.h.bf16 %v2725_v48  ;;  %v2726_v5 = vunpack.i.l.bf16 %v2725_v48 }
 0x7cf   : > { %v1921_v9 = vrot.slane %v2729_v4, 4  ;;  %v1919_v56 = vrot.slane %v2726_v5, 4 }
 0x7d1   : > { %v1920_v10 = vsel %vm508_vm8, %v1919_v56, %v2729_v4  ;;  %v1922_v11 = vsel %vm508_vm8, %v2726_v5, %v1921_v9 }
 0x7d2   : > { %v1926_v13 = vperm.slane %v1920_v10, %v3054_v58  ;;  %v1930_v15 = vperm.slane %v1922_v11, %v3054_v58  ;;  %v3295_v10 = vld [vmem:[%s3019_s0] sm:$0xff] }
 0x7d3   : > { %v2039_v11 = vperm.slane %v3295_v10, 4 }
 0x7d4   : > { %v1931_v16 = vrot.slane %v1926_v13, 4  ;;  %v1934_v17 = vsel %vm508_vm8, %v1926_v13, %v1933_v55  ;;  %v1943_v18 = vrot.slane %v1930_v15, 4  ;;  %v1946_v19 = vsel %vm508_vm8, %v1930_v15, %v1945_v12  ;;  %v2757_v13 = vld [vmem:[#allocation2] sm:$0xff] }
 0x7d5   : > { %v1942_v59 = vperm.slane %v1934_v17, %v3063_v8  ;;  %v1954_v20 = vperm.slane %v1946_v19, %v3063_v8 }
 0x7d6   : > { %v1932_v21 = vsel %vm508_vm8, %v1931_v16, %v1914_v6  ;;  %v1944_v22 = vsel %vm508_vm8, %v1943_v18, %v1918_v7 }
 0x7d7   : > { %v1938_v23 = vperm.slane %v1932_v21, %v3063_v8  ;;  %v1950_v24 = vperm.slane %v1944_v22, %v3063_v8  ;;  %v1957_v25 = vrot.slane %v1942_v59, 4  ;;  %v1961_v26 = vrot.slane %v1954_v20, 4  ;;  %v2552_v22 = vld [vmem:[%s3009_s27 + $0x8] sm:$0xff] }
 0x7d8   : > { %2122 = vmatpush.bf16.msra.mxu3 %v2552_v22 }
 0x7d9   : > { %v1958_v27 = vsel %vm508_vm8, 0.0, %v1957_v25  ;;  %v1955_v28 = vrot.slane %v1938_v23, 4  ;;  %v1959_v29 = vrot.slane %v1950_v24, 4  ;;  %v1962_v30 = vsel %vm508_vm8, 0.0, %v1961_v26 }
 0x7da   : > { %v1963_v31 = vsel %vm508_vm8, %v1957_v25, %v1938_v23  ;;  %v1968_v32 = vrot.slane %v1958_v27, 4  ;;  %v1974_v33 = vsel %vm508_vm8, %v1961_v26, %v1950_v24  ;;  %v1979_v34 = vrot.slane %v1962_v30, 4  ;;  %v2551_v23 = vld [vmem:[%s3009_s27] sm:$0xff] }
 0x7db   : > { %v1956_v35 = vsel %vm508_vm8, 0.0, %v1955_v28  ;;  %v1960_v36 = vsel %vm508_vm8, 0.0, %v1959_v29  ;;  %v1967_v37 = vperm.slane %v1963_v31, %v3054_v58  ;;  %v1978_v38 = vperm.slane %v1974_v33, %v3054_v58 }
 0x7dc   : > { %v1969_v39 = vsel %vm508_vm8, %v1968_v32, %v1956_v35  ;;  %v1980_v40 = vsel %vm508_vm8, %v1979_v34, %v1960_v36  ;;  %2123 = vmatpush.bf16.msra.mxu3 %v2551_v23  ;;  %v2091_v33 = vperm.slane %v3295_v10, 2  ;;  %v2093_v36 = vperm.slane %v3295_v10, 3 }
 0x7dd   : > { %v1973_v42 = vperm.slane %v1969_v39, %v3054_v58  ;;  %v1984_v49 = vperm.slane %v1980_v40, %v3054_v58  ;;  %v1987_v50 = vrot.slane %v1967_v37, 4  ;;  %v1999_v47 = vrot.slane %v1978_v38, 4  ;;  %v2560_v40 = vld [vmem:[%s3014_s26 + $0x38] sm:$0xff] }
 0x7de   : > { %2215 = vmatpush.bf16.msrb.mxu0 %v2560_v40 }
 0x7df   : > { %v1988_v44 = vsel %vm508_vm8, %v1973_v42, %v1987_v50  ;;  %v2000_v51 = vsel %vm508_vm8, %v1984_v49, %v1999_v47  ;;  %v1985_v52 = vrot.slane %v1973_v42, 4  ;;  %v1997_v45 = vrot.slane %v1984_v49, 4  ;;  %v2559_v42 = vld [vmem:[%s3014_s26 + $0x30] sm:$0xff]  ;;  %v2558_v49 = vld [vmem:[%s3014_s26 + $0x28] sm:$0xff]  ;;  %v2557_v50 = vld [vmem:[%s3014_s26 + $0x20] sm:$0xff] }
 0x7e0   : > { %v1996_v53 = vperm.slane %v1988_v44, %v3063_v8  ;;  %v2008_v54 = vperm.slane %v2000_v51, %v3063_v8  ;;  %v2556_v47 = vld [vmem:[%s3014_s26 + $0x18] sm:$0xff]  ;;  %v2555_v44 = vld [vmem:[%s3014_s26 + $0x10] sm:$0xff]  ;;  %v2100_v51 = vperm.slane %v3295_v10, 6 }
 0x7e1   : > { %v1986_v46 = vsel %vm508_vm8, %v1985_v52, %v1967_v37  ;;  %v1998_v57 = vsel %vm508_vm8, %v1997_v45, %v1978_v38  ;;  %v2554_v52 = vld [vmem:[%s3014_s26 + $0x8] sm:$0xff] }
 0x7e2   : > { %v2015_v41 = vrot.slane %v1996_v53, 4  ;;  %v2013_v60 = vrot.slane %v2008_v54, 4  ;;  %v1992_v58 = vperm.slane %v1986_v46, %v3063_v8  ;;  %v2004_v43 = vperm.slane %v1998_v57, %v3063_v8  ;;  %v2549_v8 = vld [vmem:[%s3004_s22] sm:$0xff]  ;;  %2216 = vmatpush.bf16.msrb.mxu0 %v2559_v42 }
 0x7e3   : > { %2062 = vmatpush.bf16.msra.mxu2 %v2549_v8 }
 0x7e4   : > { %v2016_v61 = vsel %vm508_vm8, %v2008_v54, %v2015_v41  ;;  %v2014_v62 = vsel %vm508_vm8, %v2013_v60, %v1996_v53  ;;  %v2009_v63 = vrot.slane %v2004_v43, 4  ;;  %v2011_v0 = vrot.slane %v1992_v58, 4  ;;  %v2553_v54 = vld [vmem:[%s3014_s26] sm:$0xff] }
 0x7e5   : > { %2026 = vrot.lane.b32.xlu1 %v2016_v61, %s2867_s25  ;;  %2022 = vrot.lane.b32.xlu0 %v2014_v62, %s2868_s19 }
 0x7e6   : > { %v2012_v1 = vsel %vm508_vm8, %v2004_v43, %v2011_v0  ;;  %v2010_v2 = vsel %vm508_vm8, %v2009_v63, %v1992_v58  ;;  %2217 = vmatpush.bf16.msrb.mxu0 %v2558_v49 }
 0x7e7   : > { %2018 = vrot.lane.b32.xlu2 %v2012_v1, %s2869_s20 }
 0x7ea   : > { %2218 = vmatpush.bf16.msrb.mxu0 %v2557_v50 }
 0x7ee   : > { %2219 = vmatpush.bf16.msrb.mxu0 %v2556_v47 }
 0x7f2   : > { %2220 = vmatpush.bf16.msrb.mxu0 %v2555_v44 }
 0x7f6   : > { %2221 = vmatpush.bf16.msrb.mxu0 %v2554_v52 }
 0x7fa   : > { %2222 = vmatpush.bf16.msrb.mxu0 %v2553_v54 }
 0x841   : > { %v2019_v48 = vpop.permute.xlu2 %2018 }
 0x842   : > { %v2029_v4 = vsel %vm1173_vm10, %v2010_v2, %v2019_v48 }
 0x857   : > { %v2027_v5 = vpop.permute.xlu1 %2026  ;;  %v2023_v6 = vpop.permute.xlu0 %2022 }
 0x858   : > { %v2031_v7 = vsel %vm2030_vm11, %v2029_v4, %v2023_v6  ;;  %v2229_v6 = vperm.slane %v3295_v10, 5 }
 0x859   : > { %v2033_v9 = vsel %vm2032_vm12, %v2031_v7, %v2027_v5 }
 0x85a   : > { %v2034_v56 = vpack.c.bf16 %v2033_v9, %v2033_v9 }
 0x85c   : > { %2486 = vmatmul.msk.bf16.vlgmr.msra.gmra.mxu2 %vm429_vm3, %v2034_v56 }
 0x8df   : > { %v2064_v55 = vpop.f32.mrf.mxu2 }
 0x8e0   : > { %v2065_v12 = vadd.f32 %v2064_v55, %v2039_v11 }
 0x8e2   : > { %v3298_v15 = vadd.f32 %v2757_v13, %v2065_v12 }
 0x8e4   : > { %v2069_v16 = vsel %vm429_vm3, %v3298_v15, 0.0 }
 0x8e5   : > { %2070 = vadd.xlane.f32.xlu1 %v2069_v16 }
 0x8e7   : > { %v2066_v17 = vpop.f32.mrf.mxu2 }
 0x958   : > { %v2071_v18 = vpop.xlane.xlu1 %2070 }
 0x959   : > { %v2072_v19 = vmul.f32 %v2071_v18, %v3024_v14 }
 0x95b   : > { %v2073_v59 = vsub.f32 %v3298_v15, %v2072_v19 }
 0x95d   : > { %v2074_v20 = vmul.f32 %v2073_v59, %v2073_v59 }
 0x95f   : > { %v2075_v21 = vsel %vm429_vm3, %v2074_v20, 0.0 }
 0x960   : > { %2076 = vadd.xlane.f32.xlu2 %v2075_v21 }
 0x9d3   : > { %v2077_v24 = vpop.xlane.xlu2 %2076 }
 0x9d4   : > { %v2078_v25 = vmul.f32 %v2077_v24, %v3024_v14 }
 0x9d6   : > { %v2079_v26 = vadd.f32 1e-05, %v2078_v25 }
 0x9d8   : > { %2750 = vrsqrt.f32 %v2079_v26  ;;  %vm2086_vm14 = vweird.f32 %v2079_v26 }
 0x9de   : > { %v2751_v27 = vpop.eup %2750 }
 0x9df   : > { %v2081_v28 = vmul.f32 %v2751_v27, %v2079_v26  ;;  %vm2087_vm13 = vweird.f32 %v2751_v27 }
 0x9e0   : > { %vm2088_vm15 = vmor %vm2086_vm14, %vm2087_vm13 }
 0x9e1   : > { %v2082_v29 = vmul.f32 %v2751_v27, %v2081_v28 }
 0x9e3   : > { %v2083_v30 = vmul.f32 0.5, %v2082_v29 }
 0x9e5   : > { %v2084_v31 = vsub.f32 1.5, %v2083_v30 }
 0x9e7   : > { %v2085_v32 = vmul.f32 %v2751_v27, %v2084_v31 }
 0x9e9   : > { %v2089_v34 = vsel %vm2088_vm15, %v2751_v27, %v2085_v32 }
 0x9ea   : > { %v2090_v35 = vmul.f32 %v2089_v34, %v2073_v59 }
 0x9ec   : > { %v2092_v37 = vmul.f32 %v2091_v33, %v2090_v35 }
 0x9ee   : > { %v2094_v38 = vadd.f32 %v2093_v36, %v2092_v37 }
 0x9f0   : > { %v2095_v39 = vpack.c.bf16 %v2094_v38, %v2094_v38 }
 0x9f2   : > { %2495 = vmatmul.msk.bf16.vlgmr.msra.gmra.mxu3 %vm429_vm3, %v2095_v39 }
 0xa75   : > { %v2125_v45 = vpop.f32.mrf.mxu3 }
 0xa76   : > { %v2126_v53 = vadd.f32 %v2125_v45, %v2100_v51 }
 0xa78   : > { %v2496_v46 = vmul.f32 -1.702, %v2126_v53 }
 0xa7a   : > { %v2131_v57 = vmul.f32 1.442695, %v2496_v46 }
 0xa7c   : > { %2752 = vpow2.f32 %v2131_v57 }
 0xa7d   : > { %v2127_v41 = vpop.f32.mrf.mxu3 }
 0xa82   : > { %v2753_v60 = vpop.eup %2752 }
 0xa83   : > { %v2133_v58 = vadd.f32 1.0, %v2753_v60 }
 0xa85   : > { %2754 = vrcp.f32 %v2133_v58  ;;  %v2145_v63 = vand.u32 2147483648, %v2133_v58  ;;  %v2143_v1 = vand.u32 2147483647, %v2133_v58  ;;  %vm2139_vm1 = vweird.f32 %v2133_v58 }
 0xa87   : > { %v2146_v3 = vor.u32 1.1754944e-38, %v2145_v63  ;;  %vm2144_vm4 = vcmp.eq.f32.partialorder %v2143_v1, 8.507059e+37 }
 0xa8b   : > { %v2755_v43 = vpop.eup %2754 }
 0xa8c   : > { %v2135_v61 = vmul.f32 %v2755_v43, %v2133_v58  ;;  %vm2140_vm0 = vweird.f32 %v2755_v43 }
 0xa8d   : > { %vm2141_vm2 = vmor %vm2139_vm1, %vm2140_vm0 }
 0xa8e   : > { %v2136_v62 = vsub.f32 1.0, %v2135_v61 }
 0xa90   : > { %v2137_v0 = vmul.f32 %v2755_v43, %v2136_v62 }
 0xa92   : > { %v2138_v2 = vadd.f32 %v2755_v43, %v2137_v0 }
 0xa94   : > { %v2142_v8 = vsel %vm2141_vm2, %v2755_v43, %v2138_v2 }
 0xa95   : > { %v2147_v48 = vsel %vm2144_vm4, %v2146_v3, %v2142_v8 }
 0xa96   : > { %v2149_v4 = vmul.f32 %v2147_v48, %v2126_v53 }
 0xa98   : > { %v2150_v5 = vpack.c.bf16 %v2149_v4, %v2149_v4 }
 0xa9a   : > { %2223 = vmatmul.bf16.vlgmr.msrb.gmra.mxu0 %v2150_v5 }
 0xb17   : > { %v2224_v7 = vpop.f32.mrf.mxu0 }
 0xb18   : > { %v2228_v9 = vadd.f32 %v2224_v7, %v3298_v15 }
 0xb1a   : > { %v2230_v56 = vadd.f32 %v2229_v6, %v2228_v9 }
 0xb1b   : > { %2235 = sbr.rel (%p2529_p1) target bundleno = 3252 (0xcb4), region = 60 }
 0xb1c   : > { %2231 = vst.msk [vmem:[#allocation2] sm:$0xff] %vm429_vm3, %v2230_v56 }
 0xb1f   : > { %v2226_v11 = vpop.f32.mrf.mxu0 }
 0xb20   : > { %v2238_v55 = vsel %vm429_vm3, %v2230_v56, 0.0  ;;  %v2562_v15 = vld [vmem:[%s3397_s7 + $0x8] sm:$0xff]  ;;  %v2561_v18 = vld [vmem:[%s3397_s7] sm:$0xff] }
 0xb21   : > { %2239 = vadd.xlane.f32.xlu0 %v2238_v55  ;;  %2290 = vmatpush.bf16.msra.mxu0 %v2562_v15  ;;  %v2758_v27 = vld [vmem:[%s3396_s6] ss:$0 sm:$0xff] }
 0xb25   : > { %2291 = vmatpush.bf16.msra.mxu0 %v2561_v18 }
 0xb94   : > { %v2240_v12 = vpop.xlane.xlu0 %2239 }
 0xb95   : > { %v2241_v13 = vmul.f32 %v2240_v12, %v3024_v14 }
 0xb97   : > { %v2242_v16 = vsub.f32 %v2230_v56, %v2241_v13 }
 0xb99   : > { %v2243_v17 = vmul.f32 %v2242_v16, %v2242_v16 }
 0xb9b   : > { %v2244_v10 = vsel %vm429_vm3, %v2243_v17, 0.0 }
 0xb9c   : > { %2245 = vadd.xlane.f32.xlu0 %v2244_v10 }
 0xc0f   : > { %v2246_v19 = vpop.xlane.xlu0 %2245 }
 0xc10   : > { %v2247_v59 = vmul.f32 %v2246_v19, %v3024_v14  ;;  %v2759_v14 = vld [vmem:[%s3396_s6 + $0x1] ss:$0 sm:$0xff] }
 0xc12   : > { %v2248_v20 = vadd.f32 1e-05, %v2247_v59 }
 0xc14   : > { %2760 = vrsqrt.f32 %v2248_v20  ;;  %vm2255_vm6 = vweird.f32 %v2248_v20 }
 0xc1a   : > { %v2761_v21 = vpop.eup %2760 }
 0xc1b   : > { %v2250_v22 = vmul.f32 %v2761_v21, %v2248_v20  ;;  %vm2256_vm5 = vweird.f32 %v2761_v21 }
 0xc1c   : > { %vm2257_vm7 = vmor %vm2255_vm6, %vm2256_vm5 }
 0xc1d   : > { %v2251_v23 = vmul.f32 %v2761_v21, %v2250_v22 }
 0xc1f   : > { %v2252_v24 = vmul.f32 0.5, %v2251_v23 }
 0xc21   : > { %v2253_v25 = vsub.f32 1.5, %v2252_v24 }
 0xc23   : > { %v2254_v26 = vmul.f32 %v2761_v21, %v2253_v25 }
 0xc25   : > { %v2258_v28 = vsel %vm2257_vm7, %v2761_v21, %v2254_v26 }
 0xc26   : > { %v2259_v29 = vmul.f32 %v2258_v28, %v2242_v16 }
 0xc28   : > { %v2261_v30 = vmul.f32 %v2758_v27, %v2259_v29 }
 0xc2a   : > { %v2263_v31 = vadd.f32 %v2759_v14, %v2261_v30 }
 0xc2c   : > { %v2264_v32 = vpack.c.bf16 %v2263_v31, %v2263_v31 }
 0xc2e   : > { %2538 = vmatmul.msk.bf16.vlgmr.msra.gmra.mxu0 %vm429_vm3, %v2264_v32 }
 0xcab   : > { %v2293_v33 = vpop.f32.mrf.mxu0 }
 0xcac   : > { %2297 = vst.msk [vmem:[%s381_s10] sm:$0xff] %vm429_vm3, %v2293_v33 }
 0xcb3   : > { %v2295_v34 = vpop.f32.mrf.mxu0 }
 0xcb4 PF: > { %s2540_s15 = sshll.u32 %s2844_s9, 3  ;;  %s2311_s12 = sshll.u32 %s381_s10, 4  ;;  %s2312_s12 = int_to_ptr.vmem [resolvable:$true] %s2311_s12 }
 0xcb5   : > { %s2309_s11 = scalar_lea.hbm %s3398_s8, %s2540_s15  ;;  %s3421_s21 = sand.u32 1, %s2832_s28  }
 0xcb6   : > { %s2313_s18 = sshll.u32 %s2309_s11, 4  ;;  %s2299_s25 = scalar_lea.sflag [#allocation5], %s3421_s21  ;;  %s2314_s18 = int_to_ptr.hbm [resolvable:$true] %s2313_s18 }
 0xcb7   : > { %s2776_s19 = sshra.s32 %s2314_s18, 4  ;;  %s2782_s27 = scalar_lea.hbm %s3398_s8, 16  ;;  %s2777_s19 = int_to_ptr.hbm [resolvable:$true] %s2776_s19 }
 0xcb8   : > { %s2778_s20 = scalar_lea.hbm %s2777_s19, 8  ;;  %p2783_p6 = scmp.lt.s32.totalorder %s2777_s19, %s3398_s8 }
 0xcb9   : > { %p2779_p2 = scmp.ne.s32.totalorder %s2777_s19, %s2778_s20  ;;  %p2784_p7 = scmp.lt.s32.totalorder %s2782_s27, %s2778_s20 }
 0xcbb   : > { %p2780_p4 = pnand %p2779_p2, %p2964_p3  ;;  %p2785_p8 = por %p2784_p7, %p2783_p6 }
 0xcbd   : > { %p2781_p5 = pneg %p2780_p4 }
 0xcbf   : > { %p2786_p10 = pnand %p2785_p8, %p2781_p5 }
 0xcc1   : > { %2789 = shalt.err (!%p2786_p10)
}
 0xcc2   : > { %2563 = dma.vmem_to_hbm [thread:$0]  (%p2964_p3), %s2312_s12, 128, %s2314_s18, %s2299_s25  }
 0xcc3 PF: > { %s3422_s23 = sld [smem:[#allocation11_spill]] }
 0xcc4   : > { %s3423_s10 = sld [smem:[#allocation7_spill]] }
 0xcc9   : > { %p2569_p11 = scmp.ge.s32.totalorder %s3422_s23, 2 }
 0xcca   : > { %s2325_s13 = sand.u32 1, %s3423_s10  }
 0xccb   : > { %p2566_p12 = pnand %p2569_p11, %p2974_p9  ;;  %s2326_s26 = scalar_lea.sflag [#allocation5], %s2325_s13 }
 0xccd   : > { %p2567_p13 = pneg %p2566_p12 }
 0xccf   : > { %2823 = dma.done.wait (%p2567_p13), %s2326_s26, 128  }
 0xcd0   : > { %2825 = vsyncadd (%p2567_p13), %s2326_s26, 4294967168  ;;  %s21_s12 = sadd.s32 1, %s3422_s23   ;;  %s3425_s14 = sld [smem:[#allocation8_spill]] }
 0xcd1   : > { %p18_p0 = scmp.ge.s32.totalorder %s21_s12, 6   ;;  %s3426_s29 = sld [smem:[#allocation15_spill]] }
 0xcd2   : > { %s3427_s30 = sld [smem:[#allocation9_spill]]  ;;  %s3431_s27 = smov %s2832_s28 }
 0xcd3   : > { %s3428_s9 = sld [smem:[#allocation10_spill]]  ;;  %20 = sbr.rel (!%p18_p0) target bundleno = 7 (0x7), region = 110 }
 0xcd4   : > { %s3429_s10 = sld [smem:[#allocation12_spill]] }
 0xcd5   : > { %s3430_s11 = sld [smem:[#allocation13_spill]] }
 0xcd6   : > { %s3432_s28 = smov %s3425_s14 }
 0xcd8   :  { %2332 = vsyncpa [#allocation5], 1 }
 0xcd9   :  { %2334 = vsyncpa [#allocation5 + $0x1], 1 }

</bundles_post_ra>
